<compile_context>
chip_gen: v6e
topology: v6e:2x2x1
jax: 0.10.0
libtpu: 0.0.40
codegen_flags: <defaults>
</compile_context>

<pallas_src>
import jax
import jax.numpy as jnp
from jax import lax
from jax.experimental import pallas as pl
from jax.experimental.pallas import tpu as pltpu

LAYER_SIZES = [462, 512, 256, 128]
F_IN = LAYER_SIZES[0]          # 462
F_PAD = 512                    # 462 padded up to a lane-aligned K (zero lanes/rows)
H1 = LAYER_SIZES[1]            # 512
H2 = LAYER_SIZES[2]            # 256


def _round_up(x, m):
    return ((x + m - 1) // m) * m


def _mlp_kernel(x_ref, w1_ref, b1_ref, w2_ref, b2_ref, w34_ref, b34_ref,
                out_ref, xpad_ref):
    """Fused MLP for one batch tile; weights stay VMEM-resident across the grid."""
    cdtype = w1_ref.dtype
    tb = x_ref.shape[0]
    chunk = xpad_ref.shape[0]
    n_chunks = tb // chunk

    # Zero the 462 -> 512 pad lanes once per tile (the first 462 lanes are rewritten
    # for every sub-chunk) -> the K=512 contraction is exactly zero-padded.
    xpad_ref[:, F_IN:] = jnp.zeros((chunk, F_PAD - F_IN), cdtype)

    def chunk_body(c, carry):
        r0 = pl.multiple_of(c * chunk, chunk)

        # Fused cast (f32 -> compute dtype) + lane pad 462 -> 512, all in VMEM.
        xpad_ref[:, :F_IN] = x_ref[pl.ds(r0, chunk), :].astype(cdtype)
        xp = xpad_ref[...]                                        # [chunk, 512]

        # Layer 1: [chunk,512] @ [512,512] on the MXU, f32 accumulate; bias+ReLU on f32.
        h1 = jnp.dot(xp, w1_ref[...], preferred_element_type=jnp.float32) + b1_ref[...]
        h1 = jnp.maximum(h1, 0.0)

        # Layer 2: [chunk,512] @ [512,256], f32 accumulate; bias+ReLU on f32.
        h2 = jnp.dot(h1.astype(cdtype), w2_ref[...],
                     preferred_element_type=jnp.float32) + b2_ref[...]
        h2 = jnp.maximum(h2, 0.0)

        # Folded layers 3+4 (256 -> 1): tiny trans-B matmul so the result is already
        # lane-oriented ([1, chunk]) -> dense store into the lane-dense output block.
        orow = jnp.einsum("ok,nk->on", w34_ref[...], h2,
                          preferred_element_type=jnp.float32) + b34_ref[...]
        out_ref[pl.ds(c, 1), :] = orow.astype(out_ref.dtype)
        return carry

    lax.fori_loop(0, n_chunks, chunk_body, 0, unroll=min(2, n_chunks))


def init_params(key, layer_sizes=LAYER_SIZES):
    """PyTorch-Linear-like init; weights stored transposed as [in, out]."""
    dims = list(layer_sizes) + [1]                                # 462, 512, 256, 128, 1
    params = []
    for i in range(len(dims) - 1):
        fan_in, fan_out = dims[i], dims[i + 1]
        key, kw, kb = jax.random.split(key, 3)
        bound = 1.0 / jnp.sqrt(fan_in)
        w = jax.random.uniform(kw, (fan_in, fan_out), jnp.float32, -bound, bound)
        b = jax.random.uniform(kb, (1, fan_out), jnp.float32, -bound, bound)
        params.append((w, b))
    return params


def prepare_params(params, compute_dtype=jnp.bfloat16):
    """Pad W1's K dim 462->512 (zero rows), fold layers 3+4 (exact), cast MXU operands."""
    (w1, b1), (w2, b2), (w3, b3), (w4, b4) = params
    w1p = jnp.pad(w1, ((0, F_PAD - F_IN), (0, 0)))                # zero rows -> exact
    w34 = (w3 @ w4).T                                             # [1, 256] row vector
    b34 = b3 @ w4 + b4                                            # [1, 1]
    cd = compute_dtype
    return (w1p.astype(cd), b1.astype(jnp.float32),
            w2.astype(cd), b2.astype(jnp.float32),
            w34.astype(jnp.float32), b34.astype(jnp.float32))


def single_task_net(x, packed, *, block_b=2048, chunk_rows=512):
    """x: [B, 462] float32 -> [B, 1] float32.

    block_b:    batch rows per grid step (DMA tile). 2048 is a good default on
                v5e/v6e/v7x; 4096 also fits the 48 MiB vmem limit on v5e/v6e.
    chunk_rows: in-kernel compute sub-chunk; bounds h1/h2 intermediates (~1.5 MiB).
    """
    w1, b1, w2, b2, w34, b34 = packed
    B, f_in = x.shape
    assert f_in == F_IN

    # Tile selection: 128-aligned rows, >= 2 grid steps when possible (keeps both
    # v7x TensorCores busy), tile a multiple of the compute sub-chunk.
    b_pad = _round_up(B, 128)
    min_tiles = 2 if b_pad >= 256 else 1
    n_tiles = max(pl.cdiv(b_pad, block_b), min_tiles)
    tb = _round_up(pl.cdiv(b_pad, n_tiles), 128)
    chunk = min(chunk_rows, tb)
    tb = _round_up(tb, chunk)
    n_chunks = tb // chunk
    bp = n_tiles * tb

    # Only materialize a batch pad when B is not already tile-aligned.
    if bp != B:
        x = jnp.pad(x, ((0, bp - B), (0, 0)))

    itemsize = jnp.dtype(w1.dtype).itemsize
    param_bytes = (w1.size + w2.size) * itemsize + (b1.size + b2.size + w34.size + b34.size) * 4
    cost = pl.CostEstimate(
        flops=2 * bp * (F_PAD * H1 + H1 * H2 + H2 * 1),
        transcendentals=0,
        bytes_accessed=bp * F_IN * 4 + bp * 4 + param_bytes,
    )

    out = pl.pallas_call(
        _mlp_kernel,
        out_shape=jax.ShapeDtypeStruct((n_tiles, n_chunks, chunk), jnp.float32),
        grid=(n_tiles,),
        in_specs=[
            # Raw f32 input, full 462-lane extent (== array dim, so legal): no
            # wrapper-side pad/cast, single HBM pass.
            pl.BlockSpec((tb, F_IN), lambda i: (i, 0)),
            # Weights / biases: constant index_map -> VMEM-resident, never re-DMA'd.
            pl.BlockSpec((F_PAD, H1), lambda i: (0, 0)),
            pl.BlockSpec((1, H1), lambda i: (0, 0)),
            pl.BlockSpec((H1, H2), lambda i: (0, 0)),
            pl.BlockSpec((1, H2), lambda i: (0, 0)),
            pl.BlockSpec((1, H2), lambda i: (0, 0)),
            pl.BlockSpec((1, 1), lambda i: (0, 0)),
        ],
        # Lane-dense output: batch index lives in the lane dimension.
        out_specs=pl.BlockSpec((None, n_chunks, chunk), lambda i: (i, 0, 0)),
        scratch_shapes=[pltpu.VMEM((chunk, F_PAD), w1.dtype)],    # zero-padded x chunk
        compiler_params=pltpu.CompilerParams(
            dimension_semantics=("parallel",),                    # megacore on v7x
            vmem_limit_bytes=48 * 1024 * 1024,
        ),
        cost_estimate=cost,
    )(x, w1, b1, w2, b2, w34, b34)

    # (n_tiles, n_chunks, chunk) -> (bp,) is contiguous/free; slice the real rows.
    return out.reshape(-1)[:B].reshape(B, 1)


def _reference(x, params):
    (w1, b1), (w2, b2), (w3, b3), (w4, b4) = params
    hp = lax.Precision.HIGHEST
    h = jnp.maximum(jnp.dot(x, w1, precision=hp) + b1, 0.0)
    h = jnp.maximum(jnp.dot(h, w2, precision=hp) + b2, 0.0)
    h = jnp.dot(h, w3, precision=hp) + b3
    return jnp.dot(h, w4, precision=hp) + b4


if __name__ == "__main__":
    key = jax.random.PRNGKey(0)
    key_x, key_p = jax.random.split(key)

    B = 8
    x = jax.random.normal(key_x, (B, F_IN), jnp.float32)
    params = init_params(key_p)
    ref = _reference(x, params)

    # Default path: bf16 MXU operands, f32 accumulation (loose tolerance for the cast).
    packed_bf16 = prepare_params(params)                          # bf16 by default
    out_bf16 = jax.block_until_ready(single_task_net(x, packed_bf16))
    assert out_bf16.shape == (B, 1)
    assert jnp.allclose(out_bf16, ref, atol=5e-2, rtol=5e-2), "bf16 kernel mismatch"

    # Opt-in f32 accuracy mode (exact vs. reference).
    packed_f32 = prepare_params(params, jnp.float32)
    out_f32 = jax.block_until_ready(single_task_net(x, packed_f32))
    assert out_f32.shape == (B, 1)
    assert jnp.allclose(out_f32, ref, atol=1e-4, rtol=1e-4), "f32 kernel mismatch"

    print("KERNEL_OK")
</pallas_src>

<mosaic_0001>
module attributes {stable_mosaic.version = 11 : i64} {
  func.func @_mlp_kernel(%arg0: i32, %arg1: memref<128x462xf32, #tpu.memory_space<vmem>>, %arg2: memref<512x512xbf16, #tpu.memory_space<vmem>>, %arg3: memref<1x512xf32, #tpu.memory_space<vmem>>, %arg4: memref<512x256xbf16, #tpu.memory_space<vmem>>, %arg5: memref<1x256xf32, #tpu.memory_space<vmem>>, %arg6: memref<1x256xf32, #tpu.memory_space<vmem>>, %arg7: memref<1x1xf32, #tpu.memory_space<vmem>>, %arg8: memref<1x1x128xf32, #tpu.memory_space<vmem>>, %arg9: memref<128x512xbf16, #tpu.memory_space<vmem>>) attributes {dimension_semantics = [#tpu.dimension_semantics<parallel>], iteration_bounds = array<i64: 1>, scalar_prefetch = 0 : i64, scratch_operands = 1 : i64, tpu.core_type = #tpu.core_type<tc>, window_params = [{transform_indices = @transform_0, window_bounds = array<i64: 128, 462>}, {pipeline_mode = #tpu.pipeline_mode<synchronous>, transform_indices = @transform_1, window_bounds = array<i64: 512, 512>}, {pipeline_mode = #tpu.pipeline_mode<synchronous>, transform_indices = @transform_2, window_bounds = array<i64: 1, 512>}, {pipeline_mode = #tpu.pipeline_mode<synchronous>, transform_indices = @transform_3, window_bounds = array<i64: 512, 256>}, {pipeline_mode = #tpu.pipeline_mode<synchronous>, transform_indices = @transform_4, window_bounds = array<i64: 1, 256>}, {pipeline_mode = #tpu.pipeline_mode<synchronous>, transform_indices = @transform_5, window_bounds = array<i64: 1, 256>}, {pipeline_mode = #tpu.pipeline_mode<synchronous>, transform_indices = @transform_6, window_bounds = array<i64: 1, 1>}, {transform_indices = @transform_7, window_bounds = array<i64: 1, 1, 128>}]} {
    %cst = arith.constant 0.000000e+00 : bf16
    %0 = vector.broadcast %cst : bf16 to vector<128x50xbf16>
    %c0 = arith.constant 0 : index
    %c462 = arith.constant 462 : index
    %1 = vector.load %arg9[%c0, %c462] : memref<128x512xbf16, #tpu.memory_space<vmem>>, vector<128x50xbf16>
    tpu.vector_store %arg9[%c0, %c462], %0 {strides = array<i32>} : memref<128x512xbf16, #tpu.memory_space<vmem>>, vector<128x50xbf16>,
    %c0_i32 = arith.constant 0 : i32
    %c128_i32 = arith.constant 128 : i32
    %2 = arith.muli %c0_i32, %c128_i32 : i32
    %3 = tpu.assume_multiple %2, 128 : i32
    %4 = arith.index_cast %3 : i32 to index
    %c0_0 = arith.constant 0 : index
    %5 = vector.load %arg1[%4, %c0_0] : memref<128x462xf32, #tpu.memory_space<vmem>>, vector<128x462xf32>
    %6 = arith.truncf %5 : vector<128x462xf32> to vector<128x462xbf16>
    %c0_1 = arith.constant 0 : index
    %c0_2 = arith.constant 0 : index
    %7 = vector.load %arg9[%c0_1, %c0_2] : memref<128x512xbf16, #tpu.memory_space<vmem>>, vector<128x462xbf16>
    tpu.vector_store %arg9[%c0_1, %c0_2], %6 {strides = array<i32>} : memref<128x512xbf16, #tpu.memory_space<vmem>>, vector<128x462xbf16>,
    %c0_3 = arith.constant 0 : index
    %c0_4 = arith.constant 0 : index
    %8 = vector.load %arg9[%c0_3, %c0_4] : memref<128x512xbf16, #tpu.memory_space<vmem>>, vector<128x512xbf16>
    %c0_5 = arith.constant 0 : index
    %c0_6 = arith.constant 0 : index
    %9 = vector.load %arg2[%c0_5, %c0_6] : memref<512x512xbf16, #tpu.memory_space<vmem>>, vector<512x512xbf16>
    %cst_7 = arith.constant dense<0.000000e+00> : vector<128x512xf32>
    %10 = tpu.matmul %8, %9, %cst_7 {dimension_numbers = #tpu.dot_dimension_numbers<[1], [0], [0], [1], [0, 0, 1, 1], [], []>} : vector<128x512xbf16>, vector<512x512xbf16>, vector<128x512xf32> -> vector<128x512xf32>
    %c0_8 = arith.constant 0 : index
    %c0_9 = arith.constant 0 : index
    %11 = vector.load %arg3[%c0_8, %c0_9] : memref<1x512xf32, #tpu.memory_space<vmem>>, vector<1x512xf32>
    %12 = vector.broadcast %11 : vector<1x512xf32> to vector<128x512xf32>
    %13 = arith.addf %10, %12 : vector<128x512xf32>
    %cst_10 = arith.constant 0.000000e+00 : f32
    %14 = vector.broadcast %cst_10 : f32 to vector<128x512xf32>
    %15 = arith.maximumf %13, %14 : vector<128x512xf32>
    %16 = arith.truncf %15 : vector<128x512xf32> to vector<128x512xbf16>
    %c0_11 = arith.constant 0 : index
    %c0_12 = arith.constant 0 : index
    %17 = vector.load %arg4[%c0_11, %c0_12] : memref<512x256xbf16, #tpu.memory_space<vmem>>, vector<512x256xbf16>
    %cst_13 = arith.constant dense<0.000000e+00> : vector<128x256xf32>
    %18 = tpu.matmul %16, %17, %cst_13 {dimension_numbers = #tpu.dot_dimension_numbers<[1], [0], [0], [1], [0, 0, 1, 1], [], []>} : vector<128x512xbf16>, vector<512x256xbf16>, vector<128x256xf32> -> vector<128x256xf32>
    %c0_14 = arith.constant 0 : index
    %c0_15 = arith.constant 0 : index
    %19 = vector.load %arg5[%c0_14, %c0_15] : memref<1x256xf32, #tpu.memory_space<vmem>>, vector<1x256xf32>
    %20 = vector.broadcast %19 : vector<1x256xf32> to vector<128x256xf32>
    %21 = arith.addf %18, %20 : vector<128x256xf32>
    %cst_16 = arith.constant 0.000000e+00 : f32
    %22 = vector.broadcast %cst_16 : f32 to vector<128x256xf32>
    %23 = arith.maximumf %21, %22 : vector<128x256xf32>
    %c0_17 = arith.constant 0 : index
    %c0_18 = arith.constant 0 : index
    %24 = vector.load %arg6[%c0_17, %c0_18] : memref<1x256xf32, #tpu.memory_space<vmem>>, vector<1x256xf32>
    "tpu.trace_start"() <{level = 10 : i32, message = "ok,nk->on"}> : () -> ()
    %cst_19 = arith.constant dense<0.000000e+00> : vector<1x128xf32>
    %25 = tpu.matmul %24, %23, %cst_19 {dimension_numbers = #tpu.dot_dimension_numbers<[1], [1], [0], [0], [0, 0, 1, 0], [], []>} : vector<1x256xf32>, vector<128x256xf32>, vector<1x128xf32> -> vector<1x128xf32>
    "tpu.trace_stop"() : () -> ()
    %c0_20 = arith.constant 0 : index
    %c0_21 = arith.constant 0 : index
    %26 = vector.load %arg7[%c0_20, %c0_21] : memref<1x1xf32, #tpu.memory_space<vmem>>, vector<1x1xf32>
    %27 = vector.broadcast %26 : vector<1x1xf32> to vector<1x128xf32>
    %28 = arith.addf %25, %27 : vector<1x128xf32>
    %c0_22 = arith.constant 0 : index
    %29 = arith.index_cast %c0_i32 : i32 to index
    %c0_23 = arith.constant 0 : index
    %30 = vector.load %arg8[%c0_22, %29, %c0_23] : memref<1x1x128xf32, #tpu.memory_space<vmem>>, vector<1x1x128xf32>
    %31 = vector.shape_cast %30 : vector<1x1x128xf32> to vector<1x128xf32>
    %32 = vector.shape_cast %28 : vector<1x128xf32> to vector<1x1x128xf32>
    tpu.vector_store %arg8[%c0_22, %29, %c0_23], %32 {strides = array<i32>} : memref<1x1x128xf32, #tpu.memory_space<vmem>>, vector<1x1x128xf32>,
    %c1_i32 = arith.constant 1 : i32
    return
  }
  func.func @transform_0(%arg0: i32) -> (i32, i32) {
    %c0_i32 = arith.constant 0 : i32
    %c0_i32_0 = arith.constant 0 : i32
    return %arg0, %c0_i32 : i32, i32
  }
  func.func @transform_1(%arg0: i32) -> (i32, i32) {
    %c0_i32 = arith.constant 0 : i32
    %c0_i32_0 = arith.constant 0 : i32
    %c0_i32_1 = arith.constant 0 : i32
    return %c0_i32, %c0_i32_0 : i32, i32
  }
  func.func @transform_2(%arg0: i32) -> (i32, i32) {
    %c0_i32 = arith.constant 0 : i32
    %c0_i32_0 = arith.constant 0 : i32
    %c0_i32_1 = arith.constant 0 : i32
    return %c0_i32, %c0_i32_0 : i32, i32
  }
  func.func @transform_3(%arg0: i32) -> (i32, i32) {
    %c0_i32 = arith.constant 0 : i32
    %c0_i32_0 = arith.constant 0 : i32
    %c0_i32_1 = arith.constant 0 : i32
    return %c0_i32, %c0_i32_0 : i32, i32
  }
  func.func @transform_4(%arg0: i32) -> (i32, i32) {
    %c0_i32 = arith.constant 0 : i32
    %c0_i32_0 = arith.constant 0 : i32
    %c0_i32_1 = arith.constant 0 : i32
    return %c0_i32, %c0_i32_0 : i32, i32
  }
  func.func @transform_5(%arg0: i32) -> (i32, i32) {
    %c0_i32 = arith.constant 0 : i32
    %c0_i32_0 = arith.constant 0 : i32
    %c0_i32_1 = arith.constant 0 : i32
    return %c0_i32, %c0_i32_0 : i32, i32
  }
  func.func @transform_6(%arg0: i32) -> (i32, i32) {
    %c0_i32 = arith.constant 0 : i32
    %c0_i32_0 = arith.constant 0 : i32
    %c0_i32_1 = arith.constant 0 : i32
    return %c0_i32, %c0_i32_0 : i32, i32
  }
  func.func @transform_7(%arg0: i32) -> (i32, i32, i32) {
    %c0_i32 = arith.constant 0 : i32
    %c0_i32_0 = arith.constant 0 : i32
    %c0_i32_1 = arith.constant 0 : i32
    return %arg0, %c0_i32, %c0_i32_0 : i32, i32, i32
  }
}

</mosaic_0001>

<bundles_post_ra>
// kernel: tpu_custom_call.1
= control target key start
LH: loop header
LB: loop body
LE: loop exit
PB: predicated region body
PF: predicated region fallthrough
CT: control target
= control target key end

     0   :  { %s4189_s0 = inlined_call_operand.vmem [shape: f32[128,462], index: 0, kind: input, shape index: {}]   ;;  %s4190_s1 = inlined_call_operand.hbm [shape: bf16[512,512], index: 1, kind: input, shape index: {}]   ;;  %s4191_s2 = inlined_call_operand.vmem [shape: f32[1,512], index: 2, kind: input, shape index: {}]   ;;  %s4192_s3 = inlined_call_operand.vmem [shape: bf16[512,256], index: 3, kind: input, shape index: {}]   ;;  %s4193_s4 = inlined_call_operand.vmem [shape: f32[1,256], index: 4, kind: input, shape index: {}]   ;;  %s4194_s5 = inlined_call_operand.vmem [shape: f32[1,256], index: 5, kind: input, shape index: {}]   ;;  %s4195_s6 = inlined_call_operand.<no memory space> [shape: f32[1,1], index: 6, kind: input, shape index: {}]   ;;  %s4196_s7 = inlined_call_operand.hbm [shape: f32[1,1,128], index: 7, kind: output, shape index: {}]  }
   0x1   :  { %v12_v0 = vstv %s4195_s6 }
   0x2   :  { %13 = vst [vmem:[#allocation3] sm:$0x1] %v12_v0 }
   0x3   :  { %14 = vsyncpa [#allocation5], 0 }
   0x4   :  { %15 = vsyncpa [#allocation6], 0  ;;  %s3313_s26 = smov [#allocation4]  }
   0x5   :  { %s23_s27 = sshll.u32 %s3313_s26, 4  ;;  %s24_s27 = int_to_ptr.vmem [resolvable:$true] %s23_s27 }
   0x6   :  { %s3277_s28 = scalar_lea.vmem %s24_s27, 16384  ;;  %p3282_p1 = scmp.lt.s32.totalorder %s24_s27, %s24_s27 }
   0x7   :  { %p3278_p0 = scmp.ne.s32.totalorder %s24_s27, %s3277_s28  ;;  %p3283_p2 = scmp.lt.s32.totalorder %s3277_s28, %s3277_s28 }
   0x9   :  { %p3284_p3 = por %p3283_p2, %p3282_p1 }
   0xb   :  { %p3285_p4 = pnand %p3284_p3, %p3278_p0 }
   0xd   :  { %3288 = shalt.err (!%p3285_p4)
}
   0xe   :  { %s3314_s29 = smov 256   ;;  %s3315_s30 = smov 16  }
   0xf   :  { %29 = dma.hbm_to_vmem [thread:$0]  %s4190_s1, 16384, %s24_s27, [#allocation5], %s3314_s29, %s3314_s29, %s3315_s30  }
  0x10   :  { %3309 = dma.done.wait [#allocation5], 16384  }
  0x11   :  { %3310 = vsyncadd [#allocation5], 4294950912  ;;  %vm44_vm0 = vcmask 1044080   ;;  %v3316_v1 = vmov 0   ;;  %v2941_v2 = vld [vmem:[#allocation4 + $0xe4] ss:$16 sps:$4 sm:$0xff]  }
  0x12   :  { %45 = vst.msk [vmem:[#allocation2 + $0xc] sm:$0xf] %vm44_vm0, %v3316_v1  ;;  %46 = vst.msk [vmem:[#allocation2 + $0x1c] sm:$0xf] %vm44_vm0, %v3316_v1  ;;  %2940 = vset.pattern.permute.xlu0 %v3316_v1  ;;  %v2943_v3 = vld [vmem:[#allocation4 + $0x2e4] ss:$16 sps:$4 sm:$0xff]   ;;  %1337 = vmatprep.subr.bf16.mxu0 %v2941_v2 }
  0x13   :  { %47 = vst.msk [vmem:[#allocation2 + $0x2c] sm:$0xf] %vm44_vm0, %v3316_v1  ;;  %48 = vst.msk [vmem:[#allocation2 + $0x3c] sm:$0xf] %vm44_vm0, %v3316_v1  ;;  %v2945_v4 = vld [vmem:[#allocation4 + $0xe0] ss:$16 sps:$4 sm:$0xff]   ;;  %1450 = vmatprep.subr.bf16.mxu1 %v2943_v3 }
  0x14   :  { %49 = vst.msk [vmem:[#allocation2 + $0x4c] sm:$0xf] %vm44_vm0, %v3316_v1  ;;  %50 = vst.msk [vmem:[#allocation2 + $0x5c] sm:$0xf] %vm44_vm0, %v3316_v1  ;;  %v2946_v5 = vld [vmem:[#allocation4 + $0x2e0] ss:$16 sps:$4 sm:$0xff]   ;;  %1338 = vmatpush1.bf16.msra.mxu0 %v2945_v4 }
  0x15   :  { %51 = vst.msk [vmem:[#allocation2 + $0x6c] sm:$0xf] %vm44_vm0, %v3316_v1  ;;  %52 = vst.msk [vmem:[#allocation2 + $0x7c] sm:$0xf] %vm44_vm0, %v3316_v1  ;;  %v2947_v6 = vld [vmem:[#allocation4 + $0xc4] ss:$16 sps:$4 sm:$0xff]   ;;  %1451 = vmatpush1.bf16.msra.mxu1 %v2946_v5 }
  0x16   :  { %53 = vst.msk [vmem:[#allocation2 + $0x8c] sm:$0xf] %vm44_vm0, %v3316_v1  ;;  %54 = vst.msk [vmem:[#allocation2 + $0x9c] sm:$0xf] %vm44_vm0, %v3316_v1  ;;  %v2949_v7 = vld [vmem:[#allocation4 + $0x2c4] ss:$16 sps:$4 sm:$0xff]   ;;  %1339 = vmatprep.subr.bf16.mxu0 %v2947_v6 }
  0x17   :  { %55 = vst.msk [vmem:[#allocation2 + $0xac] sm:$0xf] %vm44_vm0, %v3316_v1  ;;  %56 = vst.msk [vmem:[#allocation2 + $0xbc] sm:$0xf] %vm44_vm0, %v3316_v1  ;;  %v2951_v8 = vld [vmem:[#allocation4 + $0xc0] ss:$16 sps:$4 sm:$0xff]   ;;  %1452 = vmatprep.subr.bf16.mxu1 %v2949_v7 }
  0x18   :  { %57 = vst.msk [vmem:[#allocation2 + $0xcc] sm:$0xf] %vm44_vm0, %v3316_v1  ;;  %58 = vst.msk [vmem:[#allocation2 + $0xdc] sm:$0xf] %vm44_vm0, %v3316_v1  ;;  %v2952_v9 = vld [vmem:[#allocation4 + $0x2c0] ss:$16 sps:$4 sm:$0xff]   ;;  %1340 = vmatpush1.bf16.msra.mxu0 %v2951_v8 }
  0x19   :  { %59 = vst.msk [vmem:[#allocation2 + $0xec] sm:$0xf] %vm44_vm0, %v3316_v1  ;;  %60 = vst.msk [vmem:[#allocation2 + $0xfc] sm:$0xf] %vm44_vm0, %v3316_v1  ;;  %v2953_v10 = vld [vmem:[#allocation4 + $0xa4] ss:$16 sps:$4 sm:$0xff]   ;;  %1453 = vmatpush1.bf16.msra.mxu1 %v2952_v9 }
  0x1a   :  { %v2955_v11 = vld [vmem:[#allocation4 + $0x2a4] ss:$16 sps:$4 sm:$0xff]   ;;  %v2957_v12 = vld [vmem:[#allocation4 + $0xa0] ss:$16 sps:$4 sm:$0xff]   ;;  %1341 = vmatprep.subr.bf16.mxu0 %v2953_v10  ;;  %vm321_vm1 = vcmask 1043456   ;;  %vm322_vm2 = vcmask 637956  }
  0x1b   :  { %v2958_v13 = vld [vmem:[#allocation4 + $0x2a0] ss:$16 sps:$4 sm:$0xff]   ;;  %v2959_v14 = vld [vmem:[#allocation4 + $0x84] ss:$16 sps:$4 sm:$0xff]   ;;  %1454 = vmatprep.subr.bf16.mxu1 %v2955_v11  ;;  %vm3380_vm3 = vmor %vm322_vm2, %vm321_vm1 }
  0x1c   :  { %v2961_v15 = vld [vmem:[#allocation4 + $0x284] ss:$16 sps:$4 sm:$0xff]   ;;  %v2963_v16 = vld [vmem:[#allocation4 + $0x80] ss:$16 sps:$4 sm:$0xff]   ;;  %1342 = vmatpush1.bf16.msra.mxu0 %v2957_v12  ;;  %v3145_v46 = vld [vmem:[#allocation4 + $0x128] ss:$16 sps:$4 sm:$0xff]  }
  0x1d   :  { %1455 = vmatpush1.bf16.msra.mxu1 %v2958_v13  ;;  %v2964_v17 = vld [vmem:[#allocation4 + $0x280] ss:$16 sps:$4 sm:$0xff]   ;;  %v2965_v18 = vld [vmem:[#allocation4 + $0x64] ss:$16 sps:$4 sm:$0xff]   ;;  %1343 = vmatprep.subr.bf16.mxu0 %v2959_v14 }
  0x1e   :  { %1456 = vmatprep.subr.bf16.mxu1 %v2961_v15  ;;  %v2967_v19 = vld [vmem:[#allocation4 + $0x264] ss:$16 sps:$4 sm:$0xff]   ;;  %v2969_v20 = vld [vmem:[#allocation4 + $0x60] ss:$16 sps:$4 sm:$0xff]  }
  0x1f   :  { %v2970_v21 = vld [vmem:[#allocation4 + $0x260] ss:$16 sps:$4 sm:$0xff]   ;;  %v2971_v22 = vld [vmem:[#allocation4 + $0x44] ss:$16 sps:$4 sm:$0xff]  }
  0x20   :  { %1344 = vmatpush1.bf16.msra.mxu0 %v2963_v16  ;;  %v2973_v23 = vld [vmem:[#allocation4 + $0x244] ss:$16 sps:$4 sm:$0xff]   ;;  %v2975_v24 = vld [vmem:[#allocation4 + $0x40] ss:$16 sps:$4 sm:$0xff]  }
  0x21   :  { %1457 = vmatpush1.bf16.msra.mxu1 %v2964_v17  ;;  %1345 = vmatprep.subr.bf16.mxu0 %v2965_v18  ;;  %v2976_v25 = vld [vmem:[#allocation4 + $0x240] ss:$16 sps:$4 sm:$0xff]   ;;  %v2977_v26 = vld [vmem:[#allocation4 + $0x24] ss:$16 sps:$4 sm:$0xff]  }
  0x22   :  { %1458 = vmatprep.subr.bf16.mxu1 %v2967_v19  ;;  %v2979_v27 = vld [vmem:[#allocation4 + $0x224] ss:$16 sps:$4 sm:$0xff]   ;;  %v2981_v28 = vld [vmem:[#allocation4 + $0x20] ss:$16 sps:$4 sm:$0xff]  }
  0x23   :  { %v2982_v29 = vld [vmem:[#allocation4 + $0x220] ss:$16 sps:$4 sm:$0xff]   ;;  %v2983_v30 = vld [vmem:[#allocation4 + $0x4] ss:$16 sps:$4 sm:$0xff]  }
  0x24   :  { %1346 = vmatpush1.bf16.msra.mxu0 %v2969_v20  ;;  %v2985_v31 = vld [vmem:[#allocation4 + $0x204] ss:$16 sps:$4 sm:$0xff]   ;;  %v2987_v32 = vld [vmem:[#allocation4] ss:$16 sps:$4 sm:$0xff]  }
  0x25   :  { %1459 = vmatpush1.bf16.msra.mxu1 %v2970_v21  ;;  %1347 = vmatprep.subr.bf16.mxu0 %v2971_v22  ;;  %v2988_v33 = vld [vmem:[#allocation4 + $0x200] ss:$16 sps:$4 sm:$0xff]   ;;  %v2989_v34 = vld [vmem:[#allocation4 + $0x1e4] ss:$16 sps:$4 sm:$0xff]  }
  0x26   :  { %1460 = vmatprep.subr.bf16.mxu1 %v2973_v23  ;;  %v2991_v35 = vld [vmem:[#allocation4 + $0x3e4] ss:$16 sps:$4 sm:$0xff]   ;;  %v2993_v36 = vld [vmem:[#allocation4 + $0x1e0] ss:$16 sps:$4 sm:$0xff]  }
  0x27   :  { %v2994_v37 = vld [vmem:[#allocation4 + $0x3e0] ss:$16 sps:$4 sm:$0xff]   ;;  %v2995_v38 = vld [vmem:[#allocation4 + $0x1c4] ss:$16 sps:$4 sm:$0xff]  }
  0x28   :  { %1348 = vmatpush1.bf16.msra.mxu0 %v2975_v24  ;;  %v2997_v39 = vld [vmem:[#allocation4 + $0x3c4] ss:$16 sps:$4 sm:$0xff]   ;;  %v2999_v40 = vld [vmem:[#allocation4 + $0x1c0] ss:$16 sps:$4 sm:$0xff]  }
  0x29   :  { %1461 = vmatpush1.bf16.msra.mxu1 %v2976_v25  ;;  %1349 = vmatprep.subr.bf16.mxu0 %v2977_v26  ;;  %v3000_v41 = vld [vmem:[#allocation4 + $0x3c0] ss:$16 sps:$4 sm:$0xff]   ;;  %v3001_v42 = vld [vmem:[#allocation4 + $0x1a4] ss:$16 sps:$4 sm:$0xff]   ;;  %v3042_v25 = vld [vmem:[#allocation4 + $0xec] ss:$16 sps:$4 sm:$0xff]  }
  0x2a   :  { %1462 = vmatprep.subr.bf16.mxu1 %v2979_v27  ;;  %v3003_v43 = vld [vmem:[#allocation4 + $0x3a4] ss:$16 sps:$4 sm:$0xff]   ;;  %v3005_v44 = vld [vmem:[#allocation4 + $0x1a0] ss:$16 sps:$4 sm:$0xff]   ;;  %v3045_v26 = vld [vmem:[#allocation4 + $0x2ec] ss:$16 sps:$4 sm:$0xff]  }
  0x2b   :  { %v3006_v45 = vld [vmem:[#allocation4 + $0x3a0] ss:$16 sps:$4 sm:$0xff]   ;;  %v3007_v47 = vld [vmem:[#allocation4 + $0x184] ss:$16 sps:$4 sm:$0xff]  }
  0x2c   :  { %1350 = vmatpush1.bf16.msra.mxu0 %v2981_v28  ;;  %v3009_v48 = vld [vmem:[#allocation4 + $0x384] ss:$16 sps:$4 sm:$0xff]   ;;  %v3011_v49 = vld [vmem:[#allocation4 + $0x180] ss:$16 sps:$4 sm:$0xff]  }
  0x2d   :  { %1463 = vmatpush1.bf16.msra.mxu1 %v2982_v29  ;;  %1351 = vmatprep.subr.bf16.mxu0 %v2983_v30  ;;  %v3012_v50 = vld [vmem:[#allocation4 + $0x380] ss:$16 sps:$4 sm:$0xff]   ;;  %v3013_v52 = vld [vmem:[#allocation4 + $0x164] ss:$16 sps:$4 sm:$0xff]  }
  0x2e   :  { %1464 = vmatprep.subr.bf16.mxu1 %v2985_v31  ;;  %v3387_v51 = vld [vmem:[%s4189_s0] sm:$0xff]  ;;  %v65_v54 = vld [vmem:[%s4189_s0 + $0x8] sm:$0xff]  ;;  %v66_v57 = vld [vmem:[%s4189_s0 + $0x10] sm:$0xff] }
  0x2f   :  { %v3015_v53 = vld [vmem:[#allocation4 + $0x364] ss:$16 sps:$4 sm:$0xff]   ;;  %v3017_v0 = vld [vmem:[#allocation4 + $0x160] ss:$16 sps:$4 sm:$0xff]  }
  0x30   :  { %1352 = vmatpush1.bf16.msra.mxu0 %v2987_v32  ;;  %v3395_v55 = vld [vmem:[%s4189_s0 + $0x20] sm:$0xff]  ;;  %v69_v56 = vld [vmem:[%s4189_s0 + $0x28] sm:$0xff]  ;;  %v67_v58 = vld [vmem:[%s4189_s0 + $0x18] sm:$0xff] }
  0x31   :  { %1465 = vmatpush1.bf16.msra.mxu1 %v2988_v33  ;;  %1353 = vmatprep.subr.bf16.mxu0 %v2989_v34  ;;  %v70_v59 = vld [vmem:[%s4189_s0 + $0x30] sm:$0xff]  ;;  %v71_v60 = vld [vmem:[%s4189_s0 + $0x38] sm:$0xff]  ;;  %v2904_v61 = vpack.c.bf16 %v67_v58, %v66_v57  ;;  %v3412_v62 = vpack.c.bf16 %v69_v56, %v65_v54  ;;  %v3422_v6 = vld [vmem:[%s4189_s0 + $0x40] sm:$0xff] }
  0x32   :  { %1466 = vmatprep.subr.bf16.mxu1 %v2991_v35  ;;  %v2906_v63 = vpack.c.bf16 %v71_v60, %v70_v59  ;;  %v3018_v1 = vld [vmem:[#allocation4 + $0x360] ss:$16 sps:$4 sm:$0xff]   ;;  %v3019_v2 = vld [vmem:[#allocation4 + $0x144] ss:$16 sps:$4 sm:$0xff]   ;;  %v3040_v33 = vld [vmem:[#allocation4 + $0xe8] ss:$16 sps:$4 sm:$0xff]  }
  0x33   :  { %324 = vst.msk [vmem:[#allocation2 + $0x8] sm:$0xff] %vm3380_vm3, %v2904_v61  ;;  %v3021_v3 = vld [vmem:[#allocation4 + $0x344] ss:$16 sps:$4 sm:$0xff]   ;;  %v3023_v4 = vld [vmem:[#allocation4 + $0x140] ss:$16 sps:$4 sm:$0xff]   ;;  %1369 = vmatprep.mubr.bf16.mxu0 %v3412_v62 }
  0x34   :  { %1354 = vmatpush2.bf16.msra.mxu0 %v2993_v36  ;;  %326 = vst.msk [vmem:[#allocation2 + $0x18] sm:$0xff] %vm3380_vm3, %v2906_v63  ;;  %v3024_v5 = vld [vmem:[#allocation4 + $0x340] ss:$16 sps:$4 sm:$0xff]   ;;  %v3025_v7 = vld [vmem:[#allocation4 + $0x124] ss:$16 sps:$4 sm:$0xff]  }
  0x35   :  { %1467 = vmatpush2.bf16.msra.mxu1 %v2994_v37  ;;  %1355 = vmatprep.subr.bf16.mxu0 %v2995_v38  ;;  %v3027_v8 = vld [vmem:[#allocation4 + $0x324] ss:$16 sps:$4 sm:$0xff]   ;;  %v3029_v17 = vld [vmem:[#allocation4 + $0x120] ss:$16 sps:$4 sm:$0xff]   ;;  %v3484_v37 = vpack.c.bf16 %v3395_v55, %v3387_v51  ;;  %v3058_v54 = vld [vmem:[#allocation4 + $0x2a8] ss:$16 sps:$4 sm:$0xff]  }
  0x36   :  { %1468 = vmatprep.subr.bf16.mxu1 %v2997_v39  ;;  %v73_v9 = vld [vmem:[%s4189_s0 + $0x48] sm:$0xff]  ;;  %v3430_v10 = vld [vmem:[%s4189_s0 + $0x60] sm:$0xff]  ;;  %v74_v12 = vld [vmem:[%s4189_s0 + $0x50] sm:$0xff] }
  0x37   :  { %v77_v11 = vld [vmem:[%s4189_s0 + $0x68] sm:$0xff]  ;;  %v75_v13 = vld [vmem:[%s4189_s0 + $0x58] sm:$0xff]  ;;  %v78_v14 = vld [vmem:[%s4189_s0 + $0x70] sm:$0xff]  ;;  %v3523_v58 = vpack.c.bf16 %v3430_v10, %v3422_v6 }
  0x38   :  { %1356 = vmatpush2.bf16.msra.mxu0 %v2999_v40  ;;  %v79_v15 = vld [vmem:[%s4189_s0 + $0x78] sm:$0xff]  ;;  %v2908_v16 = vpack.c.bf16 %v75_v13, %v74_v12  ;;  %v3030_v19 = vld [vmem:[#allocation4 + $0x320] ss:$16 sps:$4 sm:$0xff]   ;;  %v81_v28 = vld [vmem:[%s4189_s0 + $0x88] sm:$0xff] }
  0x39   :  { %1469 = vmatpush2.bf16.msra.mxu1 %v3000_v41  ;;  %1357 = vmatprep.subr.bf16.mxu0 %v3001_v42  ;;  %v2910_v18 = vpack.c.bf16 %v79_v15, %v78_v14  ;;  %v3031_v21 = vld [vmem:[#allocation4 + $0x104] ss:$16 sps:$4 sm:$0xff]   ;;  %v3035_v23 = vld [vmem:[#allocation4 + $0x100] ss:$16 sps:$4 sm:$0xff]   ;;  %v3043_v39 = vld [vmem:[#allocation4 + $0x2e8] ss:$16 sps:$4 sm:$0xff]  }
  0x3a   :  { %1470 = vmatprep.subr.bf16.mxu1 %v3003_v43  ;;  %328 = vst.msk [vmem:[#allocation2 + $0x28] sm:$0xff] %vm3380_vm3, %v2908_v16  ;;  %v3033_v22 = vld [vmem:[#allocation4 + $0x304] ss:$16 sps:$4 sm:$0xff]   ;;  %v3036_v24 = vld [vmem:[#allocation4 + $0x300] ss:$16 sps:$4 sm:$0xff]  }
  0x3b   :  { %v3447_v20 = vld [vmem:[#allocation2 + $0xc] ss:$16 sps:$4 sm:$0xff]   ;;  %330 = vst.msk [vmem:[#allocation2 + $0x38] sm:$0xff] %vm3380_vm3, %v2910_v18  ;;  %v3457_v27 = vld [vmem:[%s4189_s0 + $0x80] sm:$0xff]  ;;  %v82_v31 = vld [vmem:[%s4189_s0 + $0x90] sm:$0xff] }
  0x3c   :  { %1358 = vmatpush2.bf16.msra.mxu0 %v3005_v44  ;;  %1482 = vmatprep.mubr.bf16.mxu1 %v3447_v20  ;;  %v3465_v29 = vld [vmem:[%s4189_s0 + $0xa0] sm:$0xff]  ;;  %v85_v30 = vld [vmem:[%s4189_s0 + $0xa8] sm:$0xff]  ;;  %v83_v32 = vld [vmem:[%s4189_s0 + $0x98] sm:$0xff]  ;;  %v3492_v44 = vpack.c.bf16 %v77_v11, %v73_v9 }
  0x3d   :  { %1471 = vmatpush2.bf16.msra.mxu1 %v3006_v45  ;;  %1359 = vmatprep.subr.bf16.mxu0 %v3007_v47  ;;  %v86_v34 = vld [vmem:[%s4189_s0 + $0xb0] sm:$0xff]  ;;  %v87_v35 = vld [vmem:[%s4189_s0 + $0xb8] sm:$0xff]  ;;  %v2912_v36 = vpack.c.bf16 %v83_v32, %v82_v31  ;;  %v3503_v51 = vld [vmem:[%s4189_s0 + $0xc0] sm:$0xff]  ;;  %v3555_v13 = vpack.c.bf16 %v3465_v29, %v3457_v27 }
  0x3e   :  { %1472 = vmatprep.subr.bf16.mxu1 %v3009_v48  ;;  %v3486_v38 = vld [vmem:[#allocation2 + $0x8] ss:$16 sps:$4 sm:$0xff]   ;;  %v2914_v40 = vpack.c.bf16 %v87_v35, %v86_v34  ;;  %v3048_v41 = vld [vmem:[#allocation4 + $0xcc] ss:$16 sps:$4 sm:$0xff]  }
  0x3f   :  { %332 = vst.msk [vmem:[#allocation2 + $0x48] sm:$0xff] %vm3380_vm3, %v2912_v36  ;;  %v3051_v42 = vld [vmem:[#allocation4 + $0x2cc] ss:$16 sps:$4 sm:$0xff]   ;;  %v3046_v43 = vld [vmem:[#allocation4 + $0xc8] ss:$16 sps:$4 sm:$0xff]  }
  0x40   :  { %1360 = vmatpush2.bf16.msra.mxu0 %v3011_v49  ;;  %334 = vst.msk [vmem:[#allocation2 + $0x58] sm:$0xff] %vm3380_vm3, %v2914_v40  ;;  %v3049_v47 = vld [vmem:[#allocation4 + $0x2c8] ss:$16 sps:$4 sm:$0xff]   ;;  %v3057_v48 = vld [vmem:[#allocation4 + $0xac] ss:$16 sps:$4 sm:$0xff]  }
  0x41   :  { %1473 = vmatpush2.bf16.msra.mxu1 %v3012_v50  ;;  %1361 = vmatprep.subr.bf16.mxu0 %v3013_v52  ;;  %v3060_v49 = vld [vmem:[#allocation4 + $0x2ac] ss:$16 sps:$4 sm:$0xff]   ;;  %v3064_v6 = vld [vmem:[#allocation4 + $0x288] ss:$16 sps:$4 sm:$0xff]  }
  0x42   :  { %1474 = vmatprep.subr.bf16.mxu1 %v3015_v53  ;;  %v3494_v45 = vld [vmem:[#allocation2 + $0x2c] ss:$16 sps:$4 sm:$0xff]   ;;  %v3498_v50 = vld [vmem:[#allocation2 + $0x28] ss:$16 sps:$4 sm:$0xff]   ;;  %v3513_v55 = vld [vmem:[%s4189_s0 + $0xe0] sm:$0xff] }
  0x43   :  { %v89_v52 = vld [vmem:[%s4189_s0 + $0xc8] sm:$0xff]  ;;  %v90_v57 = vld [vmem:[%s4189_s0 + $0xd0] sm:$0xff]  ;;  %v91_v59 = vld [vmem:[%s4189_s0 + $0xd8] sm:$0xff]  ;;  %v3594_v34 = vpack.c.bf16 %v3513_v55, %v3503_v51 }
  0x44   :  { %1362 = vmatpush2.bf16.msra.mxu0 %v3017_v0  ;;  %v3055_v53 = vld [vmem:[#allocation4 + $0xa8] ss:$16 sps:$4 sm:$0xff]   ;;  %v94_v60 = vld [vmem:[%s4189_s0 + $0xf0] sm:$0xff]  ;;  %v2916_v0 = vpack.c.bf16 %v91_v59, %v90_v57  ;;  %v3551_v12 = vld [vmem:[%s4189_s0 + $0x100] sm:$0xff] }
  0x45   :  { %1475 = vmatpush2.bf16.msra.mxu1 %v3018_v1  ;;  %1363 = vmatprep.subr.bf16.mxu0 %v3019_v2  ;;  %v93_v56 = vld [vmem:[%s4189_s0 + $0xe8] sm:$0xff]  ;;  %v95_v1 = vld [vmem:[%s4189_s0 + $0xf8] sm:$0xff]  ;;  %v3534_v2 = vpack.c.bf16 %v85_v30, %v81_v28  ;;  %v3601_v40 = vld [vmem:[%s4189_s0 + $0x140] sm:$0xff] }
  0x46   :  { %1476 = vmatprep.subr.bf16.mxu1 %v3021_v3  ;;  %v3063_v61 = vld [vmem:[#allocation4 + $0x8c] ss:$16 sps:$4 sm:$0xff]   ;;  %336 = vst.msk [vmem:[#allocation2 + $0x68] sm:$0xff] %vm3380_vm3, %v2916_v0  ;;  %v3070_v10 = vld [vmem:[#allocation4 + $0x68] ss:$16 sps:$4 sm:$0xff]  }
  0x47   :  { %v3066_v63 = vld [vmem:[#allocation4 + $0x28c] ss:$16 sps:$4 sm:$0xff]   ;;  %v3546_v9 = vld [vmem:[#allocation2 + $0x48] ss:$16 sps:$4 sm:$0xff]  }
  0x48   :  { %1364 = vmatpush2.bf16.msra.mxu0 %v3023_v4  ;;  %v3536_v3 = vld [vmem:[#allocation2 + $0x4c] ss:$16 sps:$4 sm:$0xff]   ;;  %v2918_v4 = vpack.c.bf16 %v95_v1, %v94_v60 }
  0x49   :  { %1477 = vmatpush2.bf16.msra.mxu1 %v3024_v5  ;;  %1365 = vmatprep.subr.bf16.mxu0 %v3025_v7  ;;  %v3061_v5 = vld [vmem:[#allocation4 + $0x88] ss:$16 sps:$4 sm:$0xff]   ;;  %v3072_v7 = vld [vmem:[#allocation4 + $0x6c] ss:$16 sps:$4 sm:$0xff]  }
  0x4a   :  { %1478 = vmatprep.subr.bf16.mxu1 %v3027_v8  ;;  %338 = vst.msk [vmem:[#allocation2 + $0x78] sm:$0xff] %vm3380_vm3, %v2918_v4  ;;  %v3075_v8 = vld [vmem:[#allocation4 + $0x26c] ss:$16 sps:$4 sm:$0xff]   ;;  %v3073_v11 = vld [vmem:[#allocation4 + $0x268] ss:$16 sps:$4 sm:$0xff]  }
  0x4b   :  { %v3078_v14 = vld [vmem:[#allocation4 + $0x4c] ss:$16 sps:$4 sm:$0xff]   ;;  %v3079_v28 = vld [vmem:[#allocation4 + $0x248] ss:$16 sps:$4 sm:$0xff]  }
  0x4c   :  { %1366 = vmatpush2.bf16.msra.mxu0 %v3029_v17  ;;  %v3081_v15 = vld [vmem:[#allocation4 + $0x24c] ss:$16 sps:$4 sm:$0xff]   ;;  %v3085_v32 = vld [vmem:[#allocation4 + $0x28] ss:$16 sps:$4 sm:$0xff]  }
  0x4d   :  { %1479 = vmatpush2.bf16.msra.mxu1 %v3030_v19  ;;  %1367 = vmatprep.subr.bf16.mxu0 %v3031_v21  ;;  %v97_v16 = vld [vmem:[%s4189_s0 + $0x108] sm:$0xff]  ;;  %v3563_v17 = vld [vmem:[%s4189_s0 + $0x120] sm:$0xff]  ;;  %v98_v19 = vld [vmem:[%s4189_s0 + $0x110] sm:$0xff] }
  0x4e   :  { %1480 = vmatprep.subr.bf16.mxu1 %v3033_v22  ;;  %v101_v18 = vld [vmem:[%s4189_s0 + $0x128] sm:$0xff]  ;;  %v99_v21 = vld [vmem:[%s4189_s0 + $0x118] sm:$0xff]  ;;  %v102_v22 = vld [vmem:[%s4189_s0 + $0x130] sm:$0xff] }
  0x4f   :  { %v3087_v30 = vld [vmem:[#allocation4 + $0x2c] ss:$16 sps:$4 sm:$0xff]   ;;  %v3618_v51 = vpack.c.bf16 %v101_v18, %v97_v16  ;;  %v3094_v55 = vld [vmem:[#allocation4 + $0x208] ss:$16 sps:$4 sm:$0xff]  }
  0x50   :  { %1368 = vmatpush2.bf16.msra.mxu0 %v3035_v23  ;;  %v103_v23 = vld [vmem:[%s4189_s0 + $0x138] sm:$0xff]  ;;  %v118_v18 = vld [vmem:[%s4189_s0 + $0x1b0] sm:$0xff] }
  0x51   :  { %1481 = vmatpush2.bf16.msra.mxu1 %v3036_v24  ;;  %1563 = vmatprep.subr.bf16.mxu0 %v3042_v25  ;;  %v2920_v24 = vpack.c.bf16 %v99_v21, %v98_v19  ;;  %v3076_v25 = vld [vmem:[#allocation4 + $0x48] ss:$16 sps:$4 sm:$0xff]   ;;  %v2922_v27 = vpack.c.bf16 %v103_v23, %v102_v22  ;;  %v3090_v31 = vld [vmem:[#allocation4 + $0x22c] ss:$16 sps:$4 sm:$0xff]  }
  0x52   :  { %1676 = vmatprep.subr.bf16.mxu1 %v3045_v26  ;;  %v3580_v26 = vpack.c.bf16 %v93_v56, %v89_v52  ;;  %v3584_v29 = vld [vmem:[#allocation2 + $0x6c] ss:$16 sps:$4 sm:$0xff]   ;;  %v3596_v35 = vld [vmem:[#allocation2 + $0x68] ss:$16 sps:$4 sm:$0xff]   ;;  %v110_v52 = vld [vmem:[%s4189_s0 + $0x170] sm:$0xff] }
  0x53   :  { %1370 = vmatmul.mubr.bf16.vlgmr.msra.gmra.mxu0 %v3484_v37  ;;  %340 = vst.msk [vmem:[#allocation2 + $0x88] sm:$0xff] %vm3380_vm3, %v2920_v24  ;;  %342 = vst.msk [vmem:[#allocation2 + $0x98] sm:$0xff] %vm3380_vm3, %v2922_v27  ;;  %v3093_v36 = vld [vmem:[#allocation4 + $0xc] ss:$16 sps:$4 sm:$0xff]   ;;  %v3103_v1 = vld [vmem:[#allocation4 + $0x3e8] ss:$16 sps:$4 sm:$0xff]  }
  0x54   :  { %1483 = vmatmul.mubr.bf16.vlgmr.msra.gmra.mxu1 %v3486_v38  ;;  %1564 = vmatpush1.bf16.msra.mxu0 %v3040_v33  ;;  %v3088_v33 = vld [vmem:[#allocation4 + $0x228] ss:$16 sps:$4 sm:$0xff]   ;;  %v3102_v59 = vld [vmem:[#allocation4 + $0x1ec] ss:$16 sps:$4 sm:$0xff]  }
  0x55   :  { %1677 = vmatpush1.bf16.msra.mxu1 %v3043_v39  ;;  %1565 = vmatprep.subr.bf16.mxu0 %v3048_v41  ;;  %v3096_v39 = vld [vmem:[#allocation4 + $0x20c] ss:$16 sps:$4 sm:$0xff]   ;;  %v3115_v24 = vld [vmem:[#allocation4 + $0x1a8] ss:$16 sps:$4 sm:$0xff]  }
  0x56   :  { %1678 = vmatprep.subr.bf16.mxu1 %v3051_v42  ;;  %1379 = vmatprep.mubr.bf16.mxu0 %v3492_v44  ;;  %v105_v41 = vld [vmem:[%s4189_s0 + $0x148] sm:$0xff]  ;;  %v108_v42 = vld [vmem:[%s4189_s0 + $0x160] sm:$0xff]  ;;  %v119_v23 = vld [vmem:[%s4189_s0 + $0x1b8] sm:$0xff] }
  0x57   :  { %1492 = vmatprep.mubr.bf16.mxu1 %v3494_v45  ;;  %v3105_v60 = vld [vmem:[#allocation4 + $0x3ec] ss:$16 sps:$4 sm:$0xff]   ;;  %v3677_v27 = vpack.c.bf16 %v108_v42, %v3601_v40 }
  0x58   :  { %1566 = vmatpush1.bf16.msra.mxu0 %v3046_v43  ;;  %v109_v43 = vld [vmem:[%s4189_s0 + $0x168] sm:$0xff]  ;;  %v120_v40 = vld [vmem:[%s4189_s0 + $0x1c0] sm:$0xff] }
  0x59   :  { %1679 = vmatpush1.bf16.msra.mxu1 %v3049_v47  ;;  %1567 = vmatprep.subr.bf16.mxu0 %v3057_v48  ;;  %v106_v47 = vld [vmem:[%s4189_s0 + $0x150] sm:$0xff]  ;;  %v107_v48 = vld [vmem:[%s4189_s0 + $0x158] sm:$0xff]  ;;  %v121_v42 = vld [vmem:[%s4189_s0 + $0x1c8] sm:$0xff] }
  0x5a   :  { %1680 = vmatprep.subr.bf16.mxu1 %v3060_v49  ;;  %v3091_v49 = vld [vmem:[#allocation4 + $0x8] ss:$16 sps:$4 sm:$0xff]   ;;  %v3108_v4 = vld [vmem:[#allocation4 + $0x1cc] ss:$16 sps:$4 sm:$0xff]  }
  0x5b   :  { %1380 = vmatmul.mubr.bf16.gmra.mxu0 %v3523_v58  ;;  %v3628_v56 = vld [vmem:[#allocation2 + $0x8c] ss:$16 sps:$4 sm:$0xff]   ;;  %v3640_v0 = vld [vmem:[#allocation2 + $0x88] ss:$16 sps:$4 sm:$0xff]  }
  0x5c   :  { %1493 = vmatmul.mubr.bf16.gmra.mxu1 %v3498_v50  ;;  %1568 = vmatpush1.bf16.msra.mxu0 %v3055_v53  ;;  %v111_v53 = vld [vmem:[%s4189_s0 + $0x178] sm:$0xff] }
  0x5d   :  { %1681 = vmatpush1.bf16.msra.mxu1 %v3058_v54  ;;  %1569 = vmatprep.subr.bf16.mxu0 %v3063_v61  ;;  %v2924_v54 = vpack.c.bf16 %v107_v48, %v106_v47  ;;  %v2926_v57 = vpack.c.bf16 %v111_v53, %v110_v52  ;;  %v3100_v61 = vld [vmem:[#allocation4 + $0x1e8] ss:$16 sps:$4 sm:$0xff]   ;;  %v3117_v16 = vld [vmem:[#allocation4 + $0x1ac] ss:$16 sps:$4 sm:$0xff]  }
  0x5e   :  { %1682 = vmatprep.subr.bf16.mxu1 %v3066_v63  ;;  %1389 = vmatprep.mubr.bf16.mxu0 %v3534_v2  ;;  %v3638_v63 = vpack.c.bf16 %v3563_v17, %v3551_v12  ;;  %v116_v12 = vld [vmem:[%s4189_s0 + $0x1a0] sm:$0xff]  ;;  %v115_v17 = vld [vmem:[%s4189_s0 + $0x198] sm:$0xff]  ;;  %v125_v47 = vld [vmem:[%s4189_s0 + $0x1e8] sm:$0xff] }
  0x5f   :  { %1502 = vmatprep.mubr.bf16.mxu1 %v3536_v3  ;;  %344 = vst.msk [vmem:[#allocation2 + $0xa8] sm:$0xff] %vm3380_vm3, %v2924_v54  ;;  %346 = vst.msk [vmem:[#allocation2 + $0xb8] sm:$0xff] %vm3380_vm3, %v2926_v57  ;;  %v3120_v21 = vld [vmem:[#allocation4 + $0x3ac] ss:$16 sps:$4 sm:$0xff]   ;;  %v3133_v57 = vld [vmem:[#allocation4 + $0x368] ss:$16 sps:$4 sm:$0xff]  }
  0x60   :  { %1570 = vmatpush1.bf16.msra.mxu0 %v3061_v5  ;;  %v3111_v5 = vld [vmem:[#allocation4 + $0x3cc] ss:$16 sps:$4 sm:$0xff]  }
  0x61   :  { %1683 = vmatpush1.bf16.msra.mxu1 %v3064_v6  ;;  %1571 = vmatprep.subr.bf16.mxu0 %v3072_v7  ;;  %v112_v6 = vld [vmem:[%s4189_s0 + $0x180] sm:$0xff]  ;;  %v113_v7 = vld [vmem:[%s4189_s0 + $0x188] sm:$0xff]  ;;  %v122_v48 = vld [vmem:[%s4189_s0 + $0x1d0] sm:$0xff] }
  0x62   :  { %1684 = vmatprep.subr.bf16.mxu1 %v3075_v8  ;;  %v3106_v8 = vld [vmem:[#allocation4 + $0x1c8] ss:$16 sps:$4 sm:$0xff]   ;;  %v126_v52 = vld [vmem:[%s4189_s0 + $0x1f0] sm:$0xff] }
  0x63   :  { %1390 = vmatmul.mubr.bf16.gmra.mxu0 %v3555_v13  ;;  %v127_v53 = vld [vmem:[%s4189_s0 + $0x1f8] sm:$0xff] }
  0x64   :  { %1503 = vmatmul.mubr.bf16.gmra.mxu1 %v3546_v9  ;;  %1572 = vmatpush1.bf16.msra.mxu0 %v3070_v10  ;;  %v3109_v10 = vld [vmem:[#allocation4 + $0x3c8] ss:$16 sps:$4 sm:$0xff]  }
  0x65   :  { %1685 = vmatpush1.bf16.msra.mxu1 %v3073_v11  ;;  %1573 = vmatprep.subr.bf16.mxu0 %v3078_v14  ;;  %v3648_v11 = vpack.c.bf16 %v109_v43, %v105_v41  ;;  %v117_v14 = vld [vmem:[%s4189_s0 + $0x1a8] sm:$0xff]  ;;  %v124_v43 = vld [vmem:[%s4189_s0 + $0x1e0] sm:$0xff] }
  0x66   :  { %1686 = vmatprep.subr.bf16.mxu1 %v3081_v15  ;;  %1399 = vmatprep.mubr.bf16.mxu0 %v3580_v26  ;;  %v114_v15 = vld [vmem:[%s4189_s0 + $0x190] sm:$0xff]  ;;  %v3667_v19 = vld [vmem:[#allocation2 + $0xac] ss:$16 sps:$4 sm:$0xff]  }
  0x67   :  { %1512 = vmatprep.mubr.bf16.mxu1 %v3584_v29  ;;  %v2928_v22 = vpack.c.bf16 %v115_v17, %v114_v15  ;;  %v3132_v41 = vld [vmem:[#allocation4 + $0x16c] ss:$16 sps:$4 sm:$0xff]   ;;  %v3730_v17 = vpack.c.bf16 %v124_v43, %v120_v40 }
  0x68   :  { %1574 = vmatpush1.bf16.msra.mxu0 %v3076_v25  ;;  %v2930_v25 = vpack.c.bf16 %v119_v23, %v118_v18  ;;  %v3150_v15 = vld [vmem:[#allocation4 + $0x32c] ss:$16 sps:$4 sm:$0xff]   ;;  %v3151_v23 = vld [vmem:[#allocation4 + $0x108] ss:$16 sps:$4 sm:$0xff]  }
  0x69   :  { %1687 = vmatpush1.bf16.msra.mxu1 %v3079_v28  ;;  %1575 = vmatprep.subr.bf16.mxu0 %v3087_v30  ;;  %348 = vst.msk [vmem:[#allocation2 + $0xc8] sm:$0xff] %vm3380_vm3, %v2928_v22  ;;  %v3679_v28 = vld [vmem:[#allocation2 + $0xa8] ss:$16 sps:$4 sm:$0xff]   ;;  %v3156_v22 = vld [vmem:[#allocation4 + $0x30c] ss:$16 sps:$4 sm:$0xff]  }
  0x6a   :  { %1688 = vmatprep.subr.bf16.mxu1 %v3090_v31  ;;  %v3118_v30 = vld [vmem:[#allocation4 + $0x3a8] ss:$16 sps:$4 sm:$0xff]   ;;  %v3123_v31 = vld [vmem:[#allocation4 + $0x18c] ss:$16 sps:$4 sm:$0xff]   ;;  %350 = vst.msk [vmem:[#allocation2 + $0xd8] sm:$0xff] %vm3380_vm3, %v2930_v25 }
  0x6b   :  { %1400 = vmatmul.mubr.bf16.gmra.mxu0 %v3594_v34  ;;  %v3159_v25 = vld [vmem:[%s4192_s3 + $0x74] ss:$8 sps:$4 sm:$0xff]   ;;  %v3211_v40 = vld [vmem:[%s4192_s3 + $0x150] ss:$8 sps:$4 sm:$0xff]   ;;  %v3186_v43 = vld [vmem:[%s4192_s3 + $0xe4] ss:$8 sps:$4 sm:$0xff]  }
  0x6c   :  { %1513 = vmatmul.mubr.bf16.gmra.mxu1 %v3596_v35  ;;  %1576 = vmatpush1.bf16.msra.mxu0 %v3085_v32  ;;  %v3126_v32 = vld [vmem:[#allocation4 + $0x38c] ss:$16 sps:$4 sm:$0xff]  }
  0x6d   :  { %1689 = vmatpush1.bf16.msra.mxu1 %v3088_v33  ;;  %1577 = vmatprep.subr.bf16.mxu0 %v3093_v36  ;;  %v3121_v33 = vld [vmem:[#allocation4 + $0x188] ss:$16 sps:$4 sm:$0xff]  }
  0x6e   :  { %1690 = vmatprep.subr.bf16.mxu1 %v3096_v39  ;;  %1409 = vmatprep.mubr.bf16.mxu0 %v3618_v51  ;;  %v3124_v36 = vld [vmem:[#allocation4 + $0x388] ss:$16 sps:$4 sm:$0xff]   ;;  %v3683_v39 = vpack.c.bf16 %v117_v14, %v113_v7  ;;  %v3141_v7 = vld [vmem:[#allocation4 + $0x34c] ss:$16 sps:$4 sm:$0xff]  }
  0x6f   :  { %1522 = vmatprep.mubr.bf16.mxu1 %v3628_v56  ;;  %v3148_v14 = vld [vmem:[#allocation4 + $0x328] ss:$16 sps:$4 sm:$0xff]  }
  0x70   :  { %1578 = vmatpush1.bf16.msra.mxu0 %v3091_v49  ;;  %v123_v49 = vld [vmem:[%s4189_s0 + $0x1d8] sm:$0xff] }
  0x71   :  { %1691 = vmatpush1.bf16.msra.mxu1 %v3094_v55  ;;  %1579 = vmatprep.subr.bf16.mxu0 %v3102_v59  ;;  %v2932_v54 = vpack.c.bf16 %v123_v49, %v122_v48  ;;  %v3130_v55 = vld [vmem:[#allocation4 + $0x168] ss:$16 sps:$4 sm:$0xff]   ;;  %v3135_v59 = vld [vmem:[#allocation4 + $0x36c] ss:$16 sps:$4 sm:$0xff]  }
  0x72   :  { %1692 = vmatprep.subr.bf16.mxu1 %v3105_v60  ;;  %v2934_v60 = vpack.c.bf16 %v127_v53, %v126_v52  ;;  %v3184_v48 = vld [vmem:[%s4192_s3 + $0xe0] ss:$8 sps:$4 sm:$0xff]   ;;  %v3222_v49 = vld [vmem:[%s4192_s3 + $0x124] ss:$8 sps:$4 sm:$0xff]   ;;  %v3223_v53 = vld [vmem:[%s4192_s3 + $0x110] ss:$8 sps:$4 sm:$0xff]  }
  0x73   :  { %1410 = vmatmul.mubr.bf16.gmra.mxu0 %v3638_v63  ;;  %352 = vst.msk [vmem:[#allocation2 + $0xe8] sm:$0xff] %vm3380_vm3, %v2932_v54  ;;  %v3192_v52 = vld [vmem:[%s4192_s3 + $0xc4] ss:$8 sps:$4 sm:$0xff]   ;;  %v3190_v54 = vld [vmem:[%s4192_s3 + $0xc0] ss:$8 sps:$4 sm:$0xff]  }
  0x74   :  { %1523 = vmatmul.mubr.bf16.gmra.mxu1 %v3640_v0  ;;  %1580 = vmatpush2.bf16.msra.mxu0 %v3100_v61  ;;  %v3712_v61 = vld [vmem:[#allocation2 + $0xcc] ss:$16 sps:$4 sm:$0xff]   ;;  %354 = vst.msk [vmem:[#allocation2 + $0xf8] sm:$0xff] %vm3380_vm3, %v2934_v60  ;;  %v3229_v60 = vld [vmem:[%s4192_s3 + $0x1f0] ss:$8 sps:$4 sm:$0xff]  }
  0x75   :  { %1693 = vmatpush2.bf16.msra.mxu1 %v3103_v1  ;;  %1581 = vmatprep.subr.bf16.mxu0 %v3108_v4  ;;  %v3714_v1 = vpack.c.bf16 %v116_v12, %v112_v6  ;;  %v3716_v4 = vld [vmem:[#allocation2 + $0xc8] ss:$16 sps:$4 sm:$0xff]   ;;  %v3147_v12 = vld [vmem:[#allocation4 + $0x12c] ss:$16 sps:$4 sm:$0xff]  }
  0x76   :  { %1694 = vmatprep.subr.bf16.mxu1 %v3111_v5  ;;  %1419 = vmatprep.mubr.bf16.mxu0 %v3648_v11  ;;  %v3138_v5 = vld [vmem:[#allocation4 + $0x14c] ss:$16 sps:$4 sm:$0xff]   ;;  %v3136_v6 = vld [vmem:[#allocation4 + $0x148] ss:$16 sps:$4 sm:$0xff]  }
  0x77   :  { %1532 = vmatprep.mubr.bf16.mxu1 %v3667_v19 }
  0x78   :  { %1582 = vmatpush2.bf16.msra.mxu0 %v3106_v8  ;;  %v3723_v8 = vpack.c.bf16 %v125_v47, %v121_v42  ;;  %v3216_v42 = vld [vmem:[%s4192_s3 + $0x144] ss:$8 sps:$4 sm:$0xff]   ;;  %v3217_v47 = vld [vmem:[%s4192_s3 + $0x130] ss:$8 sps:$4 sm:$0xff]  }
  0x79   :  { %1695 = vmatpush2.bf16.msra.mxu1 %v3109_v10  ;;  %1583 = vmatprep.subr.bf16.mxu0 %v3117_v16  ;;  %v3139_v10 = vld [vmem:[#allocation4 + $0x348] ss:$16 sps:$4 sm:$0xff]  }
  0x7a   :  { %1696 = vmatprep.subr.bf16.mxu1 %v3120_v21  ;;  %v3153_v21 = vld [vmem:[#allocation4 + $0x10c] ss:$16 sps:$4 sm:$0xff]  }
  0x7b   :  { %1420 = vmatmul.mubr.bf16.gmra.mxu0 %v3677_v27  ;;  %v3728_v16 = vld [vmem:[#allocation2 + $0xec] ss:$16 sps:$4 sm:$0xff]   ;;  %v3732_v18 = vld [vmem:[#allocation2 + $0xe8] ss:$16 sps:$4 sm:$0xff]  }
  0x7c   :  { %1533 = vmatmul.mubr.bf16.gmra.mxu1 %v3679_v28  ;;  %1584 = vmatpush2.bf16.msra.mxu0 %v3115_v24  ;;  %v3154_v24 = vld [vmem:[#allocation4 + $0x308] ss:$16 sps:$4 sm:$0xff]  }
  0x7d   :  { %1697 = vmatpush2.bf16.msra.mxu1 %v3118_v30  ;;  %1585 = vmatprep.subr.bf16.mxu0 %v3123_v31  ;;  %v3157_v30 = vld [vmem:[%s4192_s3 + $0x70] ss:$8 sps:$4 sm:$0xff]   ;;  %v3162_v31 = vld [vmem:[%s4192_s3 + $0x64] ss:$8 sps:$4 sm:$0xff]  }
  0x7e   :  { %1698 = vmatprep.subr.bf16.mxu1 %v3126_v32  ;;  %1429 = vmatprep.mubr.bf16.mxu0 %v3683_v39  ;;  %v3172_v32 = vld [vmem:[%s4192_s3 + $0x20] ss:$8 sps:$4 sm:$0xff]  }
  0x7f   :  { %1542 = vmatprep.mubr.bf16.mxu1 %v3712_v61 }
  0x80   :  { %1586 = vmatpush2.bf16.msra.mxu0 %v3121_v33  ;;  %v3177_v33 = vld [vmem:[%s4192_s3 + $0x14] ss:$8 sps:$4 sm:$0xff]  }
  0x81   :  { %1699 = vmatpush2.bf16.msra.mxu1 %v3124_v36  ;;  %1587 = vmatprep.subr.bf16.mxu0 %v3132_v41  ;;  %v3180_v36 = vld [vmem:[%s4192_s3 + $0x4] ss:$8 sps:$4 sm:$0xff]   ;;  %v3178_v41 = vld [vmem:[%s4192_s3] ss:$8 sps:$4 sm:$0xff]  }
  0x82   :  { %1700 = vmatprep.subr.bf16.mxu1 %v3135_v59  ;;  %v3198_v59 = vld [vmem:[%s4192_s3 + $0xa4] ss:$8 sps:$4 sm:$0xff]  }
  0x83   :  { %1430 = vmatmul.mubr.bf16.gmra.mxu0 %v3714_v1 }
  0x84   :  { %1543 = vmatmul.mubr.bf16.gmra.mxu1 %v3716_v4  ;;  %1588 = vmatpush2.bf16.msra.mxu0 %v3130_v55  ;;  %v3228_v55 = vld [vmem:[%s4192_s3 + $0x104] ss:$8 sps:$4 sm:$0xff]  }
  0x85   :  { %1701 = vmatpush2.bf16.msra.mxu1 %v3133_v57  ;;  %1589 = vmatprep.subr.bf16.mxu0 %v3138_v5  ;;  %v3231_v57 = vld [vmem:[%s4192_s3 + $0x1f4] ss:$8 sps:$4 sm:$0xff]   ;;  %v3234_v5 = vld [vmem:[%s4192_s3 + $0x1e4] ss:$8 sps:$4 sm:$0xff]  }
  0x86   :  { %1702 = vmatprep.subr.bf16.mxu1 %v3141_v7  ;;  %1439 = vmatprep.mubr.bf16.mxu0 %v3723_v8  ;;  %v3199_v7 = vld [vmem:[%s4192_s3 + $0x90] ss:$8 sps:$4 sm:$0xff]  }
  0x87   :  { %1552 = vmatprep.mubr.bf16.mxu1 %v3728_v16 }
  0x88   :  { %1590 = vmatpush2.bf16.msra.mxu0 %v3136_v6  ;;  %v3204_v6 = vld [vmem:[%s4192_s3 + $0x84] ss:$8 sps:$4 sm:$0xff]  }
  0x89   :  { %1703 = vmatpush2.bf16.msra.mxu1 %v3139_v10  ;;  %1591 = vmatprep.subr.bf16.mxu0 %v3147_v12  ;;  %v3235_v10 = vld [vmem:[%s4192_s3 + $0x1d0] ss:$8 sps:$4 sm:$0xff]   ;;  %v3202_v12 = vld [vmem:[%s4192_s3 + $0x80] ss:$8 sps:$4 sm:$0xff]  }
  0x8a   :  { %1704 = vmatprep.subr.bf16.mxu1 %v3150_v15  ;;  %v3243_v15 = vld [vmem:[%s4192_s3 + $0x1b4] ss:$8 sps:$4 sm:$0xff]  }
  0x8b   :  { %1440 = vmatmul.mubr.bf16.gmra.mxu0 %v3730_v17 }
  0x8c   :  { %1553 = vmatmul.mubr.bf16.gmra.mxu1 %v3732_v18  ;;  %1592 = vmatpush2.bf16.msra.mxu0 %v3145_v46  ;;  %v3240_v46 = vld [vmem:[%s4192_s3 + $0x1c4] ss:$8 sps:$4 sm:$0xff]  }
  0x8d   :  { %1705 = vmatpush2.bf16.msra.mxu1 %v3148_v14  ;;  %1593 = vmatprep.subr.bf16.mxu0 %v3153_v21  ;;  %v3238_v14 = vld [vmem:[%s4192_s3 + $0x1c0] ss:$8 sps:$4 sm:$0xff]   ;;  %v3249_v21 = vld [vmem:[%s4192_s3 + $0x194] ss:$8 sps:$4 sm:$0xff]  }
  0x8e   :  { %1706 = vmatprep.subr.bf16.mxu1 %v3156_v22  ;;  %1595 = vmatprep.mubr.bf16.mxu0 %v3412_v62  ;;  %v3160_v62 = vld [vmem:[%s4192_s3 + $0x60] ss:$8 sps:$4 sm:$0xff]   ;;  %v3247_v22 = vld [vmem:[%s4192_s3 + $0x190] ss:$8 sps:$4 sm:$0xff]  }
  0x8f   :  { %1708 = vmatprep.mubr.bf16.mxu1 %v3447_v20  ;;  %v3165_v20 = vld [vmem:[%s4192_s3 + $0x54] ss:$8 sps:$4 sm:$0xff]  }
  0x90   :  { %1594 = vmatpush2.bf16.msra.mxu0 %v3151_v23  ;;  %v3252_v23 = vld [vmem:[%s4192_s3 + $0x184] ss:$8 sps:$4 sm:$0xff]  }
  0x91   :  { %1707 = vmatpush2.bf16.msra.mxu1 %v3154_v24  ;;  %2281 = vmatprep.subr.bf16.mxu0 %v3159_v25  ;;  %v3250_v24 = vld [vmem:[%s4192_s3 + $0x180] ss:$8 sps:$4 sm:$0xff]   ;;  %v517_v25 = vlaneseq }
  0x93   :  { %1596 = vmatmul.mubr.bf16.vlgmr.msra.gmra.mxu0 %v3484_v37  ;;  %v3163_v37 = vld [vmem:[%s4192_s3 + $0x50] ss:$8 sps:$4 sm:$0xff]  }
  0x94   :  { %1709 = vmatmul.mubr.bf16.vlgmr.msra.gmra.mxu1 %v3486_v38  ;;  %1605 = vmatprep.mubr.bf16.mxu0 %v3492_v44  ;;  %v3168_v38 = vld [vmem:[%s4192_s3 + $0x44] ss:$8 sps:$4 sm:$0xff]   ;;  %v3166_v44 = vld [vmem:[%s4192_s3 + $0x40] ss:$8 sps:$4 sm:$0xff]  }
  0x95   :  { %1718 = vmatprep.mubr.bf16.mxu1 %v3494_v45  ;;  %2282 = vmatpush1.bf16.msra.mxu0 %v3157_v30  ;;  %v3171_v45 = vld [vmem:[%s4192_s3 + $0x34] ss:$8 sps:$4 sm:$0xff]   ;;  %v3961_v30 = vshrl.u32 %v517_v25, 7 }
  0x96   :  { %2283 = vmatprep.subr.bf16.mxu0 %v3162_v31 }
  0x97   :  { %v3964_v31 = vsub.s32 1, %v3961_v30 }
  0x99   :  { %2284 = vmatpush1.bf16.msra.mxu0 %v3160_v62  ;;  %v3967_v62 = vsub.s32 0, %v3961_v30 }
  0x9a   :  { %2285 = vmatprep.subr.bf16.mxu0 %v3165_v20  ;;  %v3972_v20 = vld [vmem:[%s4191_s2] sm:$0xf] }
  0x9b   :  { %1606 = vmatmul.mubr.bf16.gmra.mxu0 %v3523_v58  ;;  %v3169_v58 = vld [vmem:[%s4192_s3 + $0x30] ss:$8 sps:$4 sm:$0xff]   ;;  %4202 = vst [vmem:[#allocation10_spill] sm:$0xff] %v3967_v62 }
  0x9c   :  { %1719 = vmatmul.mubr.bf16.gmra.mxu1 %v3498_v50  ;;  %1615 = vmatprep.mubr.bf16.mxu0 %v3534_v2  ;;  %v3174_v50 = vld [vmem:[%s4192_s3 + $0x24] ss:$8 sps:$4 sm:$0xff]   ;;  %v3207_v2 = vld [vmem:[%s4192_s3 + $0x174] ss:$8 sps:$4 sm:$0xff]  }
  0x9d   :  { %1728 = vmatprep.mubr.bf16.mxu1 %v3536_v3  ;;  %2286 = vmatpush1.bf16.msra.mxu0 %v3163_v37  ;;  %v3205_v3 = vld [vmem:[%s4192_s3 + $0x170] ss:$8 sps:$4 sm:$0xff]   ;;  %v3976_v37 = vrot.slane %v3972_v20, %v3964_v31 }
  0x9e   :  { %2287 = vmatprep.subr.bf16.mxu0 %v3168_v38  ;;  %2394 = vmatprep.subr.bf16.mxu1 %v3207_v2  ;;  %v3980_v38 = vrot.slane %v3972_v20, %v3967_v62 }
  0x9f   :  { %2395 = vmatpush1.bf16.msra.mxu1 %v3205_v3 }
  0xa1   :  { %2288 = vmatpush1.bf16.msra.mxu0 %v3166_v44 }
  0xa2   :  { %2289 = vmatprep.subr.bf16.mxu0 %v3171_v45 }
  0xa3   :  { %1616 = vmatmul.mubr.bf16.gmra.mxu0 %v3555_v13  ;;  %v3210_v13 = vld [vmem:[%s4192_s3 + $0x164] ss:$8 sps:$4 sm:$0xff]  }
  0xa4   :  { %1729 = vmatmul.mubr.bf16.gmra.mxu1 %v3546_v9  ;;  %1625 = vmatprep.mubr.bf16.mxu0 %v3580_v26  ;;  %v3208_v9 = vld [vmem:[%s4192_s3 + $0x160] ss:$8 sps:$4 sm:$0xff]   ;;  %v3175_v26 = vld [vmem:[%s4192_s3 + $0x10] ss:$8 sps:$4 sm:$0xff]  }
  0xa5   :  { %1738 = vmatprep.mubr.bf16.mxu1 %v3584_v29  ;;  %2290 = vmatpush1.bf16.msra.mxu0 %v3169_v58  ;;  %v3213_v29 = vld [vmem:[%s4192_s3 + $0x154] ss:$8 sps:$4 sm:$0xff]  }
  0xa6   :  { %2291 = vmatprep.subr.bf16.mxu0 %v3174_v50  ;;  %2396 = vmatprep.subr.bf16.mxu1 %v3210_v13 }
  0xa7   :  { %2397 = vmatpush1.bf16.msra.mxu1 %v3208_v9 }
  0xa8   :  { %2398 = vmatprep.subr.bf16.mxu1 %v3213_v29 }
  0xa9   :  { %2292 = vmatpush1.bf16.msra.mxu0 %v3172_v32 }
  0xaa   :  { %2293 = vmatprep.subr.bf16.mxu0 %v3177_v33 }
  0xab   :  { %1626 = vmatmul.mubr.bf16.gmra.mxu0 %v3594_v34  ;;  %v3183_v34 = vld [vmem:[%s4192_s3 + $0xf4] ss:$8 sps:$4 sm:$0xff]   ;;  %2399 = vmatpush1.bf16.msra.mxu1 %v3211_v40 }
  0xac   :  { %1739 = vmatmul.mubr.bf16.gmra.mxu1 %v3596_v35  ;;  %1635 = vmatprep.mubr.bf16.mxu0 %v3618_v51  ;;  %v3214_v35 = vld [vmem:[%s4192_s3 + $0x140] ss:$8 sps:$4 sm:$0xff]   ;;  %v3181_v51 = vld [vmem:[%s4192_s3 + $0xf0] ss:$8 sps:$4 sm:$0xff]  }
  0xad   :  { %1748 = vmatprep.mubr.bf16.mxu1 %v3628_v56  ;;  %2294 = vmatpush1.bf16.msra.mxu0 %v3175_v26  ;;  %v3219_v56 = vld [vmem:[%s4192_s3 + $0x134] ss:$8 sps:$4 sm:$0xff]  }
  0xae   :  { %2295 = vmatprep.subr.bf16.mxu0 %v3180_v36  ;;  %2400 = vmatprep.subr.bf16.mxu1 %v3216_v42 }
  0xaf   :  { %2401 = vmatpush1.bf16.msra.mxu1 %v3214_v35 }
  0xb0   :  { %2402 = vmatprep.subr.bf16.mxu1 %v3219_v56 }
  0xb1   :  { %2296 = vmatpush1.bf16.msra.mxu0 %v3178_v41 }
  0xb2   :  { %2297 = vmatprep.subr.bf16.mxu0 %v3183_v34 }
  0xb3   :  { %1636 = vmatmul.mubr.bf16.gmra.mxu0 %v3638_v63  ;;  %v3189_v63 = vld [vmem:[%s4192_s3 + $0xd4] ss:$8 sps:$4 sm:$0xff]   ;;  %2403 = vmatpush1.bf16.msra.mxu1 %v3217_v47 }
  0xb4   :  { %1749 = vmatmul.mubr.bf16.gmra.mxu1 %v3640_v0  ;;  %1645 = vmatprep.mubr.bf16.mxu0 %v3648_v11  ;;  %v3220_v0 = vld [vmem:[%s4192_s3 + $0x120] ss:$8 sps:$4 sm:$0xff]   ;;  %v3187_v11 = vld [vmem:[%s4192_s3 + $0xd0] ss:$8 sps:$4 sm:$0xff]  }
  0xb5   :  { %1758 = vmatprep.mubr.bf16.mxu1 %v3667_v19  ;;  %2298 = vmatpush2.bf16.msra.mxu0 %v3181_v51  ;;  %v3225_v19 = vld [vmem:[%s4192_s3 + $0x114] ss:$8 sps:$4 sm:$0xff]  }
  0xb6   :  { %2299 = vmatprep.subr.bf16.mxu0 %v3186_v43  ;;  %2404 = vmatprep.subr.bf16.mxu1 %v3222_v49 }
  0xb7   :  { %2405 = vmatpush1.bf16.msra.mxu1 %v3220_v0 }
  0xb8   :  { %2406 = vmatprep.subr.bf16.mxu1 %v3225_v19 }
  0xb9   :  { %2300 = vmatpush2.bf16.msra.mxu0 %v3184_v48 }
  0xba   :  { %2301 = vmatprep.subr.bf16.mxu0 %v3189_v63 }
  0xbb   :  { %1646 = vmatmul.mubr.bf16.gmra.mxu0 %v3677_v27  ;;  %v3195_v27 = vld [vmem:[%s4192_s3 + $0xb4] ss:$8 sps:$4 sm:$0xff]   ;;  %2407 = vmatpush1.bf16.msra.mxu1 %v3223_v53 }
  0xbc   :  { %1759 = vmatmul.mubr.bf16.gmra.mxu1 %v3679_v28  ;;  %1655 = vmatprep.mubr.bf16.mxu0 %v3683_v39  ;;  %v3226_v28 = vld [vmem:[%s4192_s3 + $0x100] ss:$8 sps:$4 sm:$0xff]   ;;  %v3193_v39 = vld [vmem:[%s4192_s3 + $0xb0] ss:$8 sps:$4 sm:$0xff]  }
  0xbd   :  { %1768 = vmatprep.mubr.bf16.mxu1 %v3712_v61  ;;  %2302 = vmatpush2.bf16.msra.mxu0 %v3187_v11  ;;  %v3196_v61 = vld [vmem:[%s4192_s3 + $0xa0] ss:$8 sps:$4 sm:$0xff]  }
  0xbe   :  { %2303 = vmatprep.subr.bf16.mxu0 %v3192_v52  ;;  %2408 = vmatprep.subr.bf16.mxu1 %v3228_v55 }
  0xbf   :  { %2409 = vmatpush1.bf16.msra.mxu1 %v3226_v28 }
  0xc0   :  { %2410 = vmatprep.subr.bf16.mxu1 %v3231_v57 }
  0xc1   :  { %2304 = vmatpush2.bf16.msra.mxu0 %v3190_v54 }
  0xc2   :  { %2305 = vmatprep.subr.bf16.mxu0 %v3195_v27 }
  0xc3   :  { %1656 = vmatmul.mubr.bf16.gmra.mxu0 %v3714_v1  ;;  %v3201_v1 = vld [vmem:[%s4192_s3 + $0x94] ss:$8 sps:$4 sm:$0xff]   ;;  %2411 = vmatpush2.bf16.msra.mxu1 %v3229_v60 }
  0xc4   :  { %1769 = vmatmul.mubr.bf16.gmra.mxu1 %v3716_v4  ;;  %1665 = vmatprep.mubr.bf16.mxu0 %v3723_v8  ;;  %v3232_v4 = vld [vmem:[%s4192_s3 + $0x1e0] ss:$8 sps:$4 sm:$0xff]   ;;  %v3237_v8 = vld [vmem:[%s4192_s3 + $0x1d4] ss:$8 sps:$4 sm:$0xff]  }
  0xc5   :  { %1778 = vmatprep.mubr.bf16.mxu1 %v3728_v16  ;;  %2306 = vmatpush2.bf16.msra.mxu0 %v3193_v39  ;;  %v3241_v16 = vld [vmem:[%s4192_s3 + $0x1b0] ss:$8 sps:$4 sm:$0xff]  }
  0xc6   :  { %2307 = vmatprep.subr.bf16.mxu0 %v3198_v59  ;;  %2412 = vmatprep.subr.bf16.mxu1 %v3234_v5 }
  0xc7   :  { %2413 = vmatpush2.bf16.msra.mxu1 %v3232_v4 }
  0xc8   :  { %2414 = vmatprep.subr.bf16.mxu1 %v3237_v8 }
  0xc9   :  { %2308 = vmatpush2.bf16.msra.mxu0 %v3196_v61 }
  0xca   :  { %2309 = vmatprep.subr.bf16.mxu0 %v3201_v1 }
  0xcb   :  { %1666 = vmatmul.mubr.bf16.gmra.mxu0 %v3730_v17  ;;  %2415 = vmatpush2.bf16.msra.mxu1 %v3235_v10  ;;  %v3246_v17 = vld [vmem:[%s4192_s3 + $0x1a4] ss:$8 sps:$4 sm:$0xff]  }
  0xcc   :  { %1779 = vmatmul.mubr.bf16.gmra.mxu1 %v3732_v18  ;;  %2416 = vmatprep.subr.bf16.mxu1 %v3240_v46  ;;  %v3244_v18 = vld [vmem:[%s4192_s3 + $0x1a0] ss:$8 sps:$4 sm:$0xff]  }
  0xcd   :  { %2310 = vmatpush2.bf16.msra.mxu0 %v3199_v7 }
  0xce   :  { %2311 = vmatprep.subr.bf16.mxu0 %v3204_v6 }
  0xcf   :  { %2417 = vmatpush2.bf16.msra.mxu1 %v3238_v14 }
  0xd0   :  { %2418 = vmatprep.subr.bf16.mxu1 %v3243_v15 }
  0xd1   :  { %2312 = vmatpush2.bf16.msra.mxu0 %v3202_v12 }
  0xd3   :  { %2419 = vmatpush2.bf16.msra.mxu1 %v3241_v16 }
  0xd4   :  { %2420 = vmatprep.subr.bf16.mxu1 %v3246_v17 }
  0xd7   :  { %2421 = vmatpush2.bf16.msra.mxu1 %v3244_v18 }
  0xd8   :  { %2422 = vmatprep.subr.bf16.mxu1 %v3249_v21 }
  0xdb   :  { %2423 = vmatpush2.bf16.msra.mxu1 %v3247_v22 }
  0xdc   :  { %2424 = vmatprep.subr.bf16.mxu1 %v3252_v23 }
  0xdf   :  { %2425 = vmatpush2.bf16.msra.mxu1 %v3250_v24 }
 0x113   :  { %v1371_v44 = vpop.f32.mrf.mxu0 }
 0x114   :  { %v1484_v45 = vpop.f32.mrf.mxu1  ;;  %v1372_v3 = vadd.f32 %v1371_v44, %v3980_v38 }
 0x115   :  { %v1373_v58 = vpop.f32.mrf.mxu0 }
 0x116   :  { %v1486_v50 = vpop.f32.mrf.mxu1  ;;  %v1374_v2 = vadd.f32 %v1373_v58, %v3976_v37  ;;  %v1485_v41 = vadd.f32 %v1484_v45, %v1372_v3 }
 0x117   :  { %v1375_v32 = vpop.f32.mrf.mxu0 }
 0x118   :  { %v1488_v33 = vpop.f32.mrf.mxu1  ;;  %v1376_v13 = vadd.f32 %v1375_v32, %v3980_v38  ;;  %v1487_v29 = vadd.f32 %v1486_v50, %v1374_v2  ;;  %v1789_v63 = vmax.f32 %v1485_v41, 0.0 }
 0x119   :  { %v1377_v9 = vpop.f32.mrf.mxu0 }
 0x11a   :  { %v1490_v26 = vpop.f32.mrf.mxu1  ;;  %v1489_v36 = vadd.f32 %v1488_v33, %v1376_v13  ;;  %v1378_v40 = vadd.f32 %v1377_v9, %v3976_v37  ;;  %v1790_v47 = vmax.f32 %v1487_v29, 0.0 }
 0x11b   :  { %v1381_v42 = vpop.f32.mrf.mxu0 }
 0x11c   :  { %v1494_v34 = vpop.f32.mrf.mxu1  ;;  %v1491_v35 = vadd.f32 %v1490_v26, %v1378_v40  ;;  %v1793_v51 = vmax.f32 %v1489_v36, 0.0  ;;  %v1382_v0 = vadd.f32 %v1381_v42, %v3980_v38 }
 0x11d   :  { %v1383_v56 = vpop.f32.mrf.mxu0 }
 0x11e   :  { %v1496_v43 = vpop.f32.mrf.mxu1  ;;  %v1794_v48 = vmax.f32 %v1491_v35, 0.0  ;;  %v1384_v49 = vadd.f32 %v1383_v56, %v3976_v37  ;;  %v1853_v54 = vpack.c.bf16 %v1793_v51, %v1789_v63  ;;  %v1495_v59 = vadd.f32 %v1494_v34, %v1382_v0 }
 0x11f   :  { %v1385_v11 = vpop.f32.mrf.mxu0 }
 0x120   :  { %v1498_v19 = vpop.f32.mrf.mxu1  ;;  %v1854_v52 = vpack.c.bf16 %v1794_v48, %v1790_v47  ;;  %v1386_v53 = vadd.f32 %v1385_v11, %v3980_v38  ;;  %v1497_v28 = vadd.f32 %v1496_v43, %v1384_v49  ;;  %v1797_v12 = vmax.f32 %v1495_v59, 0.0 }
 0x121   :  { %v1387_v55 = vpop.f32.mrf.mxu0 }
 0x122   :  { %v1500_v27 = vpop.f32.mrf.mxu1  ;;  %v1499_v39 = vadd.f32 %v1498_v19, %v1386_v53  ;;  %v1388_v57 = vadd.f32 %v1387_v55, %v3976_v37  ;;  %2313 = vmatprep.mubr.bf16.mxu0 %v1854_v52  ;;  %v1798_v8 = vmax.f32 %v1497_v28, 0.0 }
 0x123   :  { %v1391_v60 = vpop.f32.mrf.mxu0  ;;  %2314 = vmatmul.mubr.bf16.vlgmr.msra.gmra.mxu0 %v1853_v54 }
 0x124   :  { %v1504_v61 = vpop.f32.mrf.mxu1  ;;  %v1501_v5 = vadd.f32 %v1500_v27, %v1388_v57  ;;  %v1801_v1 = vmax.f32 %v1499_v39, 0.0  ;;  %v1392_v46 = vadd.f32 %v1391_v60, %v3980_v38 }
 0x125   :  { %v1393_v4 = vpop.f32.mrf.mxu0 }
 0x126   :  { %v1506_v7 = vpop.f32.mrf.mxu1  ;;  %v1802_v6 = vmax.f32 %v1501_v5, 0.0  ;;  %v1394_v10 = vadd.f32 %v1393_v4, %v3976_v37  ;;  %v1857_v18 = vpack.c.bf16 %v1801_v1, %v1797_v12  ;;  %v1505_v44 = vadd.f32 %v1504_v61, %v1392_v46 }
 0x127   :  { %v1395_v14 = vpop.f32.mrf.mxu0 }
 0x128   :  { %v1508_v15 = vpop.f32.mrf.mxu1  ;;  %v1858_v16 = vpack.c.bf16 %v1802_v6, %v1798_v8  ;;  %v1396_v17 = vadd.f32 %v1395_v14, %v3980_v38  ;;  %v1507_v23 = vadd.f32 %v1506_v7, %v1394_v10  ;;  %v1805_v26 = vmax.f32 %v1505_v44, 0.0 }
 0x129   :  { %v1397_v21 = vpop.f32.mrf.mxu0 }
 0x12a   :  { %v1510_v22 = vpop.f32.mrf.mxu1  ;;  %v1509_v24 = vadd.f32 %v1508_v15, %v1396_v17  ;;  %v1398_v25 = vadd.f32 %v1397_v21, %v3976_v37  ;;  %2323 = vmatprep.mubr.bf16.mxu0 %v1858_v16  ;;  %v1806_v33 = vmax.f32 %v1507_v23, 0.0 }
 0x12b   :  { %v1401_v45 = vpop.f32.mrf.mxu0  ;;  %2324 = vmatmul.mubr.bf16.gmra.mxu0 %v1857_v18 }
 0x12c   :  { %v1514_v58 = vpop.f32.mrf.mxu1  ;;  %v1511_v50 = vadd.f32 %v1510_v22, %v1398_v25  ;;  %v1809_v2 = vmax.f32 %v1509_v24, 0.0  ;;  %v1402_v29 = vadd.f32 %v1401_v45, %v3980_v38 }
 0x12d   :  { %v1403_v3 = vpop.f32.mrf.mxu0 }
 0x12e   :  { %v1516_v32 = vpop.f32.mrf.mxu1  ;;  %v1810_v13 = vmax.f32 %v1511_v50, 0.0  ;;  %v1404_v9 = vadd.f32 %v1403_v3, %v3976_v37  ;;  %v1861_v34 = vpack.c.bf16 %v1809_v2, %v1805_v26  ;;  %v1515_v48 = vadd.f32 %v1514_v58, %v1402_v29 }
 0x12f   :  { %v1405_v36 = vpop.f32.mrf.mxu0 }
 0x130   :  { %v1518_v40 = vpop.f32.mrf.mxu1  ;;  %v1862_v41 = vpack.c.bf16 %v1810_v13, %v1806_v33  ;;  %v1406_v42 = vadd.f32 %v1405_v36, %v3980_v38  ;;  %v1517_v56 = vadd.f32 %v1516_v32, %v1404_v9  ;;  %v1813_v27 = vmax.f32 %v1515_v48, 0.0 }
 0x131   :  { %v1407_v35 = vpop.f32.mrf.mxu0 }
 0x132   :  { %v1520_v51 = vpop.f32.mrf.mxu1  ;;  %v1519_v43 = vadd.f32 %v1518_v40, %v1406_v42  ;;  %v1408_v47 = vadd.f32 %v1407_v35, %v3976_v37  ;;  %2333 = vmatprep.mubr.bf16.mxu0 %v1862_v41  ;;  %v1814_v53 = vmax.f32 %v1517_v56, 0.0 }
 0x133   :  { %v1411_v49 = vpop.f32.mrf.mxu0  ;;  %2334 = vmatmul.mubr.bf16.gmra.mxu0 %v1861_v34 }
 0x134   :  { %v1524_v63 = vpop.f32.mrf.mxu1  ;;  %v1521_v0 = vadd.f32 %v1520_v51, %v1408_v47  ;;  %v1817_v11 = vmax.f32 %v1519_v43, 0.0  ;;  %v1412_v28 = vadd.f32 %v1411_v49, %v3980_v38 }
 0x135   :  { %v1413_v19 = vpop.f32.mrf.mxu0 }
 0x136   :  { %v1526_v52 = vpop.f32.mrf.mxu1  ;;  %v1818_v54 = vmax.f32 %v1521_v0, 0.0  ;;  %v1414_v55 = vadd.f32 %v1413_v19, %v3976_v37  ;;  %v1865_v61 = vpack.c.bf16 %v1817_v11, %v1813_v27  ;;  %v1525_v6 = vadd.f32 %v1524_v63, %v1412_v28 }
 0x137   :  { %v1415_v39 = vpop.f32.mrf.mxu0 }
 0x138   :  { %v1528_v57 = vpop.f32.mrf.mxu1  ;;  %v1866_v59 = vpack.c.bf16 %v1818_v54, %v1814_v53  ;;  %v1416_v60 = vadd.f32 %v1415_v39, %v3980_v38  ;;  %v1527_v4 = vadd.f32 %v1526_v52, %v1414_v55  ;;  %v1821_v22 = vmax.f32 %v1525_v6, 0.0 }
 0x139   :  { %v1417_v5 = vpop.f32.mrf.mxu0 }
 0x13a   :  { %v1530_v1 = vpop.f32.mrf.mxu1  ;;  %v1529_v7 = vadd.f32 %v1528_v57, %v1416_v60  ;;  %v1418_v8 = vadd.f32 %v1417_v5, %v3976_v37  ;;  %2343 = vmatprep.mubr.bf16.mxu0 %v1866_v59  ;;  %v1822_v17 = vmax.f32 %v1527_v4, 0.0 }
 0x13b   :  { %v1421_v10 = vpop.f32.mrf.mxu0  ;;  %2344 = vmatmul.mubr.bf16.gmra.mxu0 %v1865_v61 }
 0x13c   :  { %v1534_v12 = vpop.f32.mrf.mxu1  ;;  %v1531_v46 = vadd.f32 %v1530_v1, %v1418_v8  ;;  %v1825_v14 = vmax.f32 %v1529_v7, 0.0  ;;  %v1422_v23 = vadd.f32 %v1421_v10, %v3980_v38  ;;  %v531_v1 = vsub.s32 3, %v3961_v30 }
 0x13d   :  { %v1423_v15 = vpop.f32.mrf.mxu0  ;;  %v527_v10 = vsub.s32 2, %v3961_v30 }
 0x13e   :  { %v1536_v16 = vpop.f32.mrf.mxu1  ;;  %v1826_v18 = vmax.f32 %v1531_v46, 0.0  ;;  %v1424_v21 = vadd.f32 %v1423_v15, %v3976_v37  ;;  %v1869_v58 = vpack.c.bf16 %v1825_v14, %v1821_v22  ;;  %v1535_v13 = vadd.f32 %v1534_v12, %v1422_v23 }
 0x13f   :  { %v1425_v24 = vpop.f32.mrf.mxu0  ;;  %v4017_v22 = vrot.slane %v3972_v20, %v531_v1 }
 0x140   :  { %v1538_v25 = vpop.f32.mrf.mxu1  ;;  %v1870_v44 = vpack.c.bf16 %v1826_v18, %v1822_v17  ;;  %v1426_v45 = vadd.f32 %v1425_v24, %v3980_v38  ;;  %v1537_v3 = vadd.f32 %v1536_v16, %v1424_v21  ;;  %v1829_v51 = vmax.f32 %v1535_v13, 0.0 }
 0x141   :  { %v1427_v50 = vpop.f32.mrf.mxu0  ;;  %v4020_v24 = vrot.slane %v3972_v20, %v527_v10 }
 0x142   :  { %v1540_v2 = vpop.f32.mrf.mxu1  ;;  %v1539_v32 = vadd.f32 %v1538_v25, %v1426_v45  ;;  %v1428_v33 = vadd.f32 %v1427_v50, %v3976_v37  ;;  %2353 = vmatprep.mubr.bf16.mxu0 %v1870_v44  ;;  %v1830_v42 = vmax.f32 %v1537_v3, 0.0 }
 0x143   :  { %v1431_v9 = vpop.f32.mrf.mxu0  ;;  %2354 = vmatmul.mubr.bf16.gmra.mxu0 %v1869_v58 }
 0x144   :  { %v1544_v26 = vpop.f32.mrf.mxu1  ;;  %v1541_v29 = vadd.f32 %v1540_v2, %v1428_v33  ;;  %v1833_v36 = vmax.f32 %v1539_v32, 0.0  ;;  %v1432_v56 = vadd.f32 %v1431_v9, %v3980_v38 }
 0x145   :  { %v1433_v40 = vpop.f32.mrf.mxu0 }
 0x146   :  { %v1546_v41 = vpop.f32.mrf.mxu1  ;;  %v1834_v34 = vmax.f32 %v1541_v29, 0.0  ;;  %v1434_v35 = vadd.f32 %v1433_v40, %v3976_v37  ;;  %v1873_v63 = vpack.c.bf16 %v1833_v36, %v1829_v51  ;;  %v1545_v54 = vadd.f32 %v1544_v26, %v1432_v56 }
 0x147   :  { %v1435_v43 = vpop.f32.mrf.mxu0 }
 0x148   :  { %v1548_v47 = vpop.f32.mrf.mxu1  ;;  %v1874_v48 = vpack.c.bf16 %v1834_v34, %v1830_v42  ;;  %v1436_v49 = vadd.f32 %v1435_v43, %v3980_v38  ;;  %v1547_v19 = vadd.f32 %v1546_v41, %v1434_v35  ;;  %v1837_v4 = vmax.f32 %v1545_v54, 0.0 }
 0x149   :  { %v1437_v0 = vpop.f32.mrf.mxu0 }
 0x14a   :  { %v1550_v11 = vpop.f32.mrf.mxu1  ;;  %v1549_v52 = vadd.f32 %v1548_v47, %v1436_v49  ;;  %v1438_v53 = vadd.f32 %v1437_v0, %v3976_v37  ;;  %2363 = vmatprep.mubr.bf16.mxu0 %v1874_v48  ;;  %v1838_v60 = vmax.f32 %v1547_v19, 0.0 }
 0x14b   :  { %v1441_v55 = vpop.f32.mrf.mxu0  ;;  %2364 = vmatmul.mubr.bf16.gmra.mxu0 %v1873_v63 }
 0x14c   :  { %v1554_v27 = vpop.f32.mrf.mxu1  ;;  %v1551_v28 = vadd.f32 %v1550_v11, %v1438_v53  ;;  %v1841_v39 = vmax.f32 %v1549_v52, 0.0  ;;  %v1442_v7 = vadd.f32 %v1441_v55, %v3980_v38 }
 0x14d   :  { %v1443_v57 = vpop.f32.mrf.mxu0 }
 0x14e   :  { %v1556_v59 = vpop.f32.mrf.mxu1  ;;  %v1842_v61 = vmax.f32 %v1551_v28, 0.0  ;;  %v1444_v5 = vadd.f32 %v1443_v57, %v3976_v37  ;;  %v1877_v14 = vpack.c.bf16 %v1841_v39, %v1837_v4  ;;  %v1555_v23 = vadd.f32 %v1554_v27, %v1442_v7 }
 0x14f   :  { %v1445_v8 = vpop.f32.mrf.mxu0 }
 0x150   :  { %v1558_v6 = vpop.f32.mrf.mxu1  ;;  %v1878_v12 = vpack.c.bf16 %v1842_v61, %v1838_v60  ;;  %v1446_v46 = vadd.f32 %v1445_v8, %v3980_v38  ;;  %v1557_v17 = vadd.f32 %v1556_v59, %v1444_v5 }
 0x151   :  { %v1447_v15 = vpop.f32.mrf.mxu0 }
 0x152   :  { %v1560_v16 = vpop.f32.mrf.mxu1  ;;  %v1559_v18 = vadd.f32 %v1558_v6, %v1446_v46  ;;  %v1448_v21 = vadd.f32 %v1447_v15, %v3976_v37  ;;  %2373 = vmatprep.mubr.bf16.mxu0 %v1878_v12  ;;  %v1846_v50 = vmax.f32 %v1557_v17, 0.0  ;;  %v1845_v37 = vmax.f32 %v1555_v23, 0.0 }
 0x153   :  { %v1597_v25 = vpop.f32.mrf.mxu0  ;;  %2374 = vmatmul.mubr.bf16.gmra.mxu0 %v1877_v14 }
 0x154   :  { %v1710_v30 = vpop.f32.mrf.mxu1  ;;  %v1561_v44 = vadd.f32 %v1560_v16, %v1448_v21  ;;  %v1849_v38 = vmax.f32 %v1559_v18, 0.0  ;;  %v1598_v32 = vadd.f32 %v1597_v25, %v4020_v24 }
 0x155   :  { %v1599_v45 = vpop.f32.mrf.mxu0 }
 0x156   :  { %v1712_v58 = vpop.f32.mrf.mxu1  ;;  %v1850_v2 = vmax.f32 %v1561_v44, 0.0  ;;  %v1600_v3 = vadd.f32 %v1599_v45, %v4017_v22  ;;  %v1881_v26 = vpack.c.bf16 %v1849_v38, %v1845_v37  ;;  %v1711_v34 = vadd.f32 %v1710_v30, %v1598_v32 }
 0x157   :  { %v1601_v33 = vpop.f32.mrf.mxu0 }
 0x158   :  { %v1714_v13 = vpop.f32.mrf.mxu1  ;;  %v1882_v9 = vpack.c.bf16 %v1850_v2, %v1846_v50  ;;  %v1602_v20 = vadd.f32 %v1601_v33, %v4020_v24  ;;  %v1713_v40 = vadd.f32 %v1712_v58, %v1600_v3  ;;  %v1791_v11 = vmax.f32 %v1711_v34, 0.0 }
 0x159   :  { %v1603_v29 = vpop.f32.mrf.mxu0 }
 0x15a   :  { %v1716_v36 = vpop.f32.mrf.mxu1  ;;  %v1715_v41 = vadd.f32 %v1714_v13, %v1602_v20  ;;  %v1604_v42 = vadd.f32 %v1603_v29, %v4017_v22  ;;  %2383 = vmatprep.mubr.bf16.mxu0 %v1882_v9  ;;  %v1792_v49 = vmax.f32 %v1713_v40, 0.0 }
 0x15b   :  { %v1607_v35 = vpop.f32.mrf.mxu0  ;;  %2384 = vmatmul.mubr.bf16.gmra.mxu0 %v1881_v26 }
 0x15c   :  { %v1720_v51 = vpop.f32.mrf.mxu1  ;;  %v1717_v56 = vadd.f32 %v1716_v36, %v1604_v42  ;;  %v1795_v43 = vmax.f32 %v1715_v41, 0.0  ;;  %v1608_v19 = vadd.f32 %v1607_v35, %v4020_v24 }
 0x15d   :  { %v1609_v47 = vpop.f32.mrf.mxu0 }
 0x15e   :  { %v1722_v48 = vpop.f32.mrf.mxu1  ;;  %v1796_v63 = vmax.f32 %v1717_v56, 0.0  ;;  %v1610_v0 = vadd.f32 %v1609_v47, %v4017_v22  ;;  %v1855_v27 = vpack.c.bf16 %v1795_v43, %v1791_v11  ;;  %v1721_v61 = vadd.f32 %v1720_v51, %v1608_v19 }
 0x15f   :  { %v1611_v52 = vpop.f32.mrf.mxu0 }
 0x160   :  { %v1724_v53 = vpop.f32.mrf.mxu1  ;;  %v1856_v54 = vpack.c.bf16 %v1796_v63, %v1792_v49  ;;  %v1612_v55 = vadd.f32 %v1611_v52, %v4020_v24  ;;  %v1723_v57 = vadd.f32 %v1722_v48, %v1610_v0  ;;  %v1799_v14 = vmax.f32 %v1721_v61, 0.0 }
 0x161   :  { %v1613_v28 = vpop.f32.mrf.mxu0 }
 0x162   :  { %v1726_v39 = vpop.f32.mrf.mxu1  ;;  %v1725_v59 = vadd.f32 %v1724_v53, %v1612_v55  ;;  %v1614_v60 = vadd.f32 %v1613_v28, %v4017_v22  ;;  %2426 = vmatprep.mubr.bf16.mxu1 %v1856_v54  ;;  %v1800_v10 = vmax.f32 %v1723_v57, 0.0 }
 0x163   :  { %v1617_v5 = vpop.f32.mrf.mxu0  ;;  %2427 = vmatmul.mubr.bf16.vlgmr.msra.gmra.mxu1 %v1855_v27 }
 0x164   :  { %v1730_v1 = vpop.f32.mrf.mxu1  ;;  %v1727_v4 = vadd.f32 %v1726_v39, %v1614_v60  ;;  %v1803_v7 = vmax.f32 %v1725_v59, 0.0  ;;  %v1618_v15 = vadd.f32 %v1617_v5, %v4020_v24 }
 0x165   :  { %v1619_v8 = vpop.f32.mrf.mxu0 }
 0x166   :  { %v1732_v6 = vpop.f32.mrf.mxu1  ;;  %v1804_v12 = vmax.f32 %v1727_v4, 0.0  ;;  %v1620_v46 = vadd.f32 %v1619_v8, %v4017_v22  ;;  %v1859_v23 = vpack.c.bf16 %v1803_v7, %v1799_v14  ;;  %v1731_v58 = vadd.f32 %v1730_v1, %v1618_v15 }
 0x167   :  { %v1621_v16 = vpop.f32.mrf.mxu0 }
 0x168   :  { %v1734_v17 = vpop.f32.mrf.mxu1  ;;  %v1860_v18 = vpack.c.bf16 %v1804_v12, %v1800_v10  ;;  %v1622_v21 = vadd.f32 %v1621_v16, %v4020_v24  ;;  %v1733_v44 = vadd.f32 %v1732_v6, %v1620_v46  ;;  %v1807_v26 = vmax.f32 %v1731_v58, 0.0 }
 0x169   :  { %v1623_v25 = vpop.f32.mrf.mxu0 }
 0x16a   :  { %v1736_v30 = vpop.f32.mrf.mxu1  ;;  %v1735_v38 = vadd.f32 %v1734_v17, %v1622_v21  ;;  %v1624_v45 = vadd.f32 %v1623_v25, %v4017_v22  ;;  %2436 = vmatprep.mubr.bf16.mxu1 %v1860_v18  ;;  %v1808_v13 = vmax.f32 %v1733_v44, 0.0 }
 0x16b   :  { %v1627_v50 = vpop.f32.mrf.mxu0  ;;  %2437 = vmatmul.mubr.bf16.gmra.mxu1 %v1859_v23 }
 0x16c   :  { %v1740_v2 = vpop.f32.mrf.mxu1  ;;  %v1737_v3 = vadd.f32 %v1736_v30, %v1624_v45  ;;  %v1811_v37 = vmax.f32 %v1735_v38, 0.0  ;;  %v1628_v29 = vadd.f32 %v1627_v50, %v4020_v24 }
 0x16d   :  { %v1629_v32 = vpop.f32.mrf.mxu0 }
 0x16e   :  { %v1742_v33 = vpop.f32.mrf.mxu1  ;;  %v1812_v9 = vmax.f32 %v1737_v3, 0.0  ;;  %v1630_v20 = vadd.f32 %v1629_v32, %v4017_v22  ;;  %v1863_v34 = vpack.c.bf16 %v1811_v37, %v1807_v26  ;;  %v1741_v48 = vadd.f32 %v1740_v2, %v1628_v29 }
 0x16f   :  { %v1631_v36 = vpop.f32.mrf.mxu0 }
 0x170   :  { %v1744_v40 = vpop.f32.mrf.mxu1  ;;  %v1864_v41 = vpack.c.bf16 %v1812_v9, %v1808_v13  ;;  %v1632_v42 = vadd.f32 %v1631_v36, %v4020_v24  ;;  %v1743_v56 = vadd.f32 %v1742_v33, %v1630_v20  ;;  %v1815_v27 = vmax.f32 %v1741_v48, 0.0 }
 0x171   :  { %v1633_v35 = vpop.f32.mrf.mxu0 }
 0x172   :  { %v1746_v51 = vpop.f32.mrf.mxu1  ;;  %v1745_v43 = vadd.f32 %v1744_v40, %v1632_v42  ;;  %v1634_v47 = vadd.f32 %v1633_v35, %v4017_v22  ;;  %2446 = vmatprep.mubr.bf16.mxu1 %v1864_v41  ;;  %v1816_v53 = vmax.f32 %v1743_v56, 0.0 }
 0x173   :  { %v1637_v49 = vpop.f32.mrf.mxu0  ;;  %2447 = vmatmul.mubr.bf16.gmra.mxu1 %v1863_v34 }
 0x174   :  { %v1750_v63 = vpop.f32.mrf.mxu1  ;;  %v1747_v0 = vadd.f32 %v1746_v51, %v1634_v47  ;;  %v1819_v11 = vmax.f32 %v1745_v43, 0.0  ;;  %v1638_v28 = vadd.f32 %v1637_v49, %v4020_v24 }
 0x175   :  { %v1639_v19 = vpop.f32.mrf.mxu0 }
 0x176   :  { %v1752_v52 = vpop.f32.mrf.mxu1  ;;  %v1820_v54 = vmax.f32 %v1747_v0, 0.0  ;;  %v1640_v55 = vadd.f32 %v1639_v19, %v4017_v22  ;;  %v1867_v61 = vpack.c.bf16 %v1819_v11, %v1815_v27  ;;  %v1751_v6 = vadd.f32 %v1750_v63, %v1638_v28 }
 0x177   :  { %v1641_v39 = vpop.f32.mrf.mxu0 }
 0x178   :  { %v1754_v57 = vpop.f32.mrf.mxu1  ;;  %v1868_v59 = vpack.c.bf16 %v1820_v54, %v1816_v53  ;;  %v1642_v60 = vadd.f32 %v1641_v39, %v4020_v24  ;;  %v1753_v4 = vadd.f32 %v1752_v52, %v1640_v55  ;;  %v1823_v23 = vmax.f32 %v1751_v6, 0.0 }
 0x179   :  { %v1643_v5 = vpop.f32.mrf.mxu0 }
 0x17a   :  { %v1756_v1 = vpop.f32.mrf.mxu1  ;;  %v1755_v7 = vadd.f32 %v1754_v57, %v1642_v60  ;;  %v1644_v8 = vadd.f32 %v1643_v5, %v4017_v22  ;;  %2456 = vmatprep.mubr.bf16.mxu1 %v1868_v59  ;;  %v1824_v17 = vmax.f32 %v1753_v4, 0.0 }
 0x17b   :  { %v1647_v10 = vpop.f32.mrf.mxu0  ;;  %2457 = vmatmul.mubr.bf16.gmra.mxu1 %v1867_v61 }
 0x17c   :  { %v1760_v12 = vpop.f32.mrf.mxu1  ;;  %v1757_v46 = vadd.f32 %v1756_v1, %v1644_v8  ;;  %v1827_v14 = vmax.f32 %v1755_v7, 0.0  ;;  %v1648_v25 = vadd.f32 %v1647_v10, %v4020_v24 }
 0x17d   :  { %v1649_v15 = vpop.f32.mrf.mxu0 }
 0x17e   :  { %v1762_v16 = vpop.f32.mrf.mxu1  ;;  %v1828_v18 = vmax.f32 %v1757_v46, 0.0  ;;  %v1650_v21 = vadd.f32 %v1649_v15, %v4017_v22  ;;  %v1871_v58 = vpack.c.bf16 %v1827_v14, %v1823_v23  ;;  %v1761_v33 = vadd.f32 %v1760_v12, %v1648_v25 }
 0x17f   :  { %v1651_v30 = vpop.f32.mrf.mxu0 }
 0x180   :  { %v1764_v44 = vpop.f32.mrf.mxu1  ;;  %v1872_v38 = vpack.c.bf16 %v1828_v18, %v1824_v17  ;;  %v1652_v45 = vadd.f32 %v1651_v30, %v4020_v24  ;;  %v1763_v3 = vadd.f32 %v1762_v16, %v1650_v21  ;;  %v1831_v34 = vmax.f32 %v1761_v33, 0.0 }
 0x181   :  { %v1653_v50 = vpop.f32.mrf.mxu0 }
 0x182   :  { %v1766_v2 = vpop.f32.mrf.mxu1  ;;  %v1765_v37 = vadd.f32 %v1764_v44, %v1652_v45  ;;  %v1654_v32 = vadd.f32 %v1653_v50, %v4017_v22  ;;  %2466 = vmatprep.mubr.bf16.mxu1 %v1872_v38  ;;  %v1832_v40 = vmax.f32 %v1763_v3, 0.0 }
 0x183   :  { %v1657_v13 = vpop.f32.mrf.mxu0  ;;  %2467 = vmatmul.mubr.bf16.gmra.mxu1 %v1871_v58 }
 0x184   :  { %v1770_v9 = vpop.f32.mrf.mxu1  ;;  %v1767_v20 = vadd.f32 %v1766_v2, %v1654_v32  ;;  %v1835_v26 = vmax.f32 %v1765_v37, 0.0  ;;  %v1658_v35 = vadd.f32 %v1657_v13, %v4020_v24 }
 0x185   :  { %v1659_v29 = vpop.f32.mrf.mxu0 }
 0x186   :  { %v1772_v36 = vpop.f32.mrf.mxu1  ;;  %v1836_v41 = vmax.f32 %v1767_v20, 0.0  ;;  %v1660_v42 = vadd.f32 %v1659_v29, %v4017_v22  ;;  %v1875_v48 = vpack.c.bf16 %v1835_v26, %v1831_v34  ;;  %v1771_v52 = vadd.f32 %v1770_v9, %v1658_v35  ;;  %v1949_v29 = vld [vmem:[%s4193_s4] sm:$0x3]  ;;  %s3317_s4 = smov [#allocation7]  }
 0x187   :  { %v1661_v51 = vpop.f32.mrf.mxu0  ;;  %v4071_v35 = vld [vmem:[%s4194_s5] sm:$0x3]  ;;  %s2638_s5 = sshll.u32 %s3317_s4, 4  ;;  %s2639_s5 = int_to_ptr.vmem [resolvable:$true] %s2638_s5 }
 0x188   :  { %v1774_v56 = vpop.f32.mrf.mxu1  ;;  %v1876_v43 = vpack.c.bf16 %v1836_v41, %v1832_v40  ;;  %v1662_v47 = vadd.f32 %v1661_v51, %v4020_v24  ;;  %v1773_v0 = vadd.f32 %v1772_v36, %v1660_v42  ;;  %v1839_v61 = vmax.f32 %v1771_v52, 0.0  ;;  %4203 = vst [vmem:[#allocation11_spill] sm:$0xff] %v4071_v35  ;;  %s3289_s12 = scalar_lea.vmem %s2639_s5, 16  ;;  %s3293_s13 = scalar_lea.vmem %s2639_s5, 32 }
 0x189   :  { %v1663_v49 = vpop.f32.mrf.mxu0  ;;  %v4060_v40 = vrot.slane %v1949_v29, %v3967_v62  ;;  %v4063_v41 = vrot.slane %v1949_v29, %v3964_v31  ;;  %p3290_p5 = scmp.ne.s32.totalorder %s2639_s5, %s3289_s12  ;;  %p3294_p6 = scmp.lt.s32.totalorder %s2639_s5, %s2639_s5 }
 0x18a   :  { %v1776_v63 = vpop.f32.mrf.mxu1  ;;  %v1775_v11 = vadd.f32 %v1774_v56, %v1662_v47  ;;  %v1664_v19 = vadd.f32 %v1663_v49, %v4017_v22  ;;  %2476 = vmatprep.mubr.bf16.mxu1 %v1876_v43  ;;  %v1840_v57 = vmax.f32 %v1773_v0, 0.0  ;;  %v2558_v56 = vrot.slane %v4071_v35, %v3964_v31  ;;  %p3295_p7 = scmp.lt.s32.totalorder %s3293_s13, %s3289_s12 }
 0x18b   :  { %v1667_v53 = vpop.f32.mrf.mxu0  ;;  %2477 = vmatmul.mubr.bf16.gmra.mxu1 %v1875_v48 }
 0x18c   :  { %v1780_v54 = vpop.f32.mrf.mxu1  ;;  %v1777_v55 = vadd.f32 %v1776_v63, %v1664_v19  ;;  %v1843_v27 = vmax.f32 %v1775_v11, 0.0  ;;  %v1668_v5 = vadd.f32 %v1667_v53, %v4020_v24  ;;  %2625 = vmatprep.mubr.f32.mxu0 %v2558_v56  ;;  %v2540_v11 = vld [vmem:[#allocation3] sm:$0x1]  ;;  %p3296_p8 = por %p3295_p7, %p3294_p6 }
 0x18d   :  { %v1669_v28 = vpop.f32.mrf.mxu0  ;;  %2543 = vperm.xlu0 %2940, %v2540_v11  }
 0x18e   :  { %v1782_v39 = vpop.f32.mrf.mxu1  ;;  %v1844_v59 = vmax.f32 %v1777_v55, 0.0  ;;  %v1670_v60 = vadd.f32 %v1669_v28, %v4017_v22  ;;  %v1879_v6 = vpack.c.bf16 %v1843_v27, %v1839_v61  ;;  %v1781_v15 = vadd.f32 %v1780_v54, %v1668_v5  ;;  %p3297_p9 = pnand %p3296_p8, %p3290_p5 }
 0x18f   :  { %v1671_v1 = vpop.f32.mrf.mxu0 }
 0x190   :  { %v1784_v4 = vpop.f32.mrf.mxu1  ;;  %v1880_v7 = vpack.c.bf16 %v1844_v59, %v1840_v57  ;;  %v1672_v8 = vadd.f32 %v1671_v1, %v4020_v24  ;;  %v1783_v12 = vadd.f32 %v1782_v39, %v1670_v60  ;;  %v1847_v25 = vmax.f32 %v1781_v15, 0.0 }
 0x191   :  { %v1673_v10 = vpop.f32.mrf.mxu0 }
 0x192   :  { %v1785_v46 = vadd.f32 %v1784_v4, %v1672_v8  ;;  %v1674_v14 = vadd.f32 %v1673_v10, %v4017_v22  ;;  %2486 = vmatprep.mubr.bf16.mxu1 %v1880_v7  ;;  %v1786_v16 = vpop.f32.mrf.mxu1  ;;  %v1848_v21 = vmax.f32 %v1783_v12, 0.0 }
 0x193   :  { %2487 = vmatmul.mubr.bf16.gmra.mxu1 %v1879_v6 }
 0x194   :  { %v1787_v17 = vadd.f32 %v1786_v16, %v1674_v14  ;;  %v1851_v18 = vmax.f32 %v1785_v46, 0.0 }
 0x196   :  { %v1852_v23 = vmax.f32 %v1787_v17, 0.0  ;;  %v1883_v44 = vpack.c.bf16 %v1851_v18, %v1847_v25 }
 0x198   :  { %v1884_v30 = vpack.c.bf16 %v1852_v23, %v1848_v21 }
 0x19a   :  { %2496 = vmatprep.mubr.bf16.mxu1 %v1884_v30 }
 0x19b   :  { %2497 = vmatmul.mubr.bf16.gmra.mxu1 %v1883_v44 }
 0x1e3   :  { %v2315_v24 = vpop.f32.mrf.mxu0 }
 0x1e4   :  { %v2316_v34 = vadd.f32 %v2315_v24, %v4060_v40 }
 0x1e5   :  { %v2317_v38 = vpop.f32.mrf.mxu0 }
 0x1e6   :  { %v2318_v43 = vadd.f32 %v2317_v38, %v4063_v41 }
 0x1e7   :  { %v2319_v45 = vpop.f32.mrf.mxu0 }
 0x1e8   :  { %v2320_v63 = vadd.f32 %v2319_v45, %v4060_v40 }
 0x1e9   :  { %v2321_v58 = vpop.f32.mrf.mxu0 }
 0x1ea   :  { %v2322_v52 = vadd.f32 %v2321_v58, %v4063_v41 }
 0x1eb   :  { %v2325_v50 = vpop.f32.mrf.mxu0 }
 0x1ec   :  { %v2326_v55 = vadd.f32 %v2325_v50, %v4060_v40 }
 0x1ed   :  { %v2327_v2 = vpop.f32.mrf.mxu0 }
 0x1ee   :  { %v2328_v39 = vadd.f32 %v2327_v2, %v4063_v41 }
 0x1ef   :  { %v2329_v22 = vpop.f32.mrf.mxu0 }
 0x1f0   :  { %v2330_v61 = vadd.f32 %v2329_v22, %v4060_v40 }
 0x1f1   :  { %v2331_v3 = vpop.f32.mrf.mxu0 }
 0x1f2   :  { %v2332_v4 = vadd.f32 %v2331_v3, %v4063_v41 }
 0x1f3   :  { %v2335_v37 = vpop.f32.mrf.mxu0 }
 0x1f4   :  { %v2336_v10 = vadd.f32 %v2335_v37, %v4060_v40 }
 0x1f5   :  { %v2337_v32 = vpop.f32.mrf.mxu0 }
 0x1f6   :  { %v2338_v14 = vadd.f32 %v2337_v32, %v4063_v41 }
 0x1f7   :  { %v2339_v33 = vpop.f32.mrf.mxu0 }
 0x1f8   :  { %v2340_v18 = vadd.f32 %v2339_v33, %v4060_v40 }
 0x1f9   :  { %v2341_v13 = vpop.f32.mrf.mxu0 }
 0x1fa   :  { %v2342_v25 = vadd.f32 %v2341_v13, %v4063_v41 }
 0x1fb   :  { %v2345_v9 = vpop.f32.mrf.mxu0 }
 0x1fc   :  { %v2346_v38 = vadd.f32 %v2345_v9, %v4060_v40 }
 0x1fd   :  { %v2347_v20 = vpop.f32.mrf.mxu0 }
 0x1fe   :  { %v2348_v50 = vadd.f32 %v2347_v20, %v4063_v41 }
 0x1ff   :  { %v2349_v26 = vpop.f32.mrf.mxu0 }
 0x200   :  { %v2350_v37 = vadd.f32 %v2349_v26, %v4060_v40 }
 0x201   :  { %v4057_v36 = vpop.f32.mrf.mxu0 }
 0x203   :  { %v4065_v42 = vpop.f32.mrf.mxu0 }
 0x205   :  { %v4078_v48 = vpop.f32.mrf.mxu0 }
 0x207   :  { %v4086_v31 = vpop.f32.mrf.mxu0 }
 0x209   :  { %v4094_v59 = vpop.f32.mrf.mxu0 }
 0x20b   :  { %v4102_v8 = vpop.f32.mrf.mxu0 }
 0x20d   :  { %v4110_v16 = vpop.f32.mrf.mxu0 }
 0x20f   :  { %v4118_v44 = vpop.f32.mrf.mxu0 }
 0x211   :  { %v2371_v22 = vpop.f32.mrf.mxu0 }
 0x213   :  { %v2375_v29 = vpop.f32.mrf.mxu0 }
 0x223   :  { %v2428_v51 = vpop.f32.mrf.mxu1 }
 0x224   :  { %v4076_v47 = vadd.f32 %v2428_v51, %v2316_v34  ;;  %v2377_v51 = vpop.f32.mrf.mxu0 }
 0x225   :  { %v2430_v49 = vpop.f32.mrf.mxu1 }
 0x226   :  { %v4081_v0 = vadd.f32 %v2430_v49, %v2318_v43  ;;  %v2379_v43 = vpop.f32.mrf.mxu0 }
 0x227   :  { %v2432_v19 = vpop.f32.mrf.mxu1 }
 0x228   :  { %v4084_v53 = vadd.f32 %v2432_v19, %v2320_v63  ;;  %v2381_v11 = vpop.f32.mrf.mxu0 }
 0x229   :  { %v2434_v54 = vpop.f32.mrf.mxu1 }
 0x22a   :  { %v4089_v27 = vadd.f32 %v2434_v54, %v2322_v52  ;;  %v2385_v52 = vpop.f32.mrf.mxu0 }
 0x22b   :  { %v2438_v28 = vpop.f32.mrf.mxu1 }
 0x22c   :  { %v4092_v57 = vadd.f32 %v2438_v28, %v2326_v55  ;;  %v2387_v28 = vpop.f32.mrf.mxu0 }
 0x22d   :  { %v2440_v60 = vpop.f32.mrf.mxu1 }
 0x22e   :  { %v4097_v5 = vadd.f32 %v2440_v60, %v2328_v39 }
 0x22f   :  { %v2442_v1 = vpop.f32.mrf.mxu1 }
 0x230   :  { %v4100_v7 = vadd.f32 %v2442_v1, %v2330_v61  ;;  %v2389_v61 = vpop.f32.mrf.mxu0 }
 0x231   :  { %v2444_v6 = vpop.f32.mrf.mxu1 }
 0x232   :  { %v4105_v12 = vadd.f32 %v2444_v6, %v2332_v4  ;;  %v2391_v6 = vpop.f32.mrf.mxu0 }
 0x233   :  { %v2448_v46 = vpop.f32.mrf.mxu1 }
 0x234   :  { %v4108_v15 = vadd.f32 %v2448_v46, %v2336_v10  ;;  %v2390_v46 = vadd.f32 %v2389_v61, %v4060_v40  ;;  %v2380_v61 = vadd.f32 %v2379_v43, %v4060_v40  ;;  %v2370_v43 = vadd.f32 %v4118_v44, %v4060_v40 }
 0x235   :  { %v2450_v17 = vpop.f32.mrf.mxu1 }
 0x236   :  { %v4113_v21 = vadd.f32 %v2450_v17, %v2338_v14  ;;  %v2388_v17 = vadd.f32 %v2387_v28, %v4063_v41  ;;  %v2378_v28 = vadd.f32 %v2377_v51, %v4063_v41 }
 0x237   :  { %v2452_v23 = vpop.f32.mrf.mxu1 }
 0x238   :  { %v4116_v30 = vadd.f32 %v2452_v23, %v2340_v18  ;;  %v2392_v18 = vadd.f32 %v2391_v6, %v4063_v41 }
 0x239   :  { %v2454_v24 = vpop.f32.mrf.mxu1 }
 0x23a   :  { %v4121_v45 = vadd.f32 %v2454_v24, %v2342_v25 }
 0x23b   :  { %v2458_v58 = vpop.f32.mrf.mxu1 }
 0x23c   :  { %v4124_v2 = vadd.f32 %v2458_v58, %v2346_v38  ;;  %v2386_v58 = vadd.f32 %v2385_v52, %v4060_v40  ;;  %v2376_v52 = vadd.f32 %v2375_v29, %v4060_v40 }
 0x23d   :  { %v2460_v3 = vpop.f32.mrf.mxu1 }
 0x23e   :  { %v4127_v32 = vadd.f32 %v2460_v3, %v2348_v50  ;;  %v2382_v50 = vadd.f32 %v2381_v11, %v4063_v41  ;;  %v2372_v11 = vadd.f32 %v2371_v22, %v4063_v41  ;;  %v2366_v22 = vadd.f32 %v4102_v8, %v4060_v40 }
 0x23f   :  { %v2462_v33 = vpop.f32.mrf.mxu1 }
 0x240   :  { %v4129_v13 = vadd.f32 %v2462_v33, %v2350_v37 }
 0x241   :  { %v4131_v34 = vpop.f32.mrf.mxu1 }
 0x243   :  { %v4133_v9 = vpop.f32.mrf.mxu1 }
 0x245   :  { %v4135_v56 = vpop.f32.mrf.mxu1 }
 0x247   :  { %v4137_v20 = vpop.f32.mrf.mxu1 }
 0x249   :  { %v2474_v49 = vpop.f32.mrf.mxu1 }
 0x24b   :  { %v2478_v63 = vpop.f32.mrf.mxu1 }
 0x24d   :  { %v2480_v26 = vpop.f32.mrf.mxu1 }
 0x24f   :  { %v2482_v19 = vpop.f32.mrf.mxu1 }
 0x250   :  { %v2483_v51 = vadd.f32 %v2482_v19, %v2370_v43 }
 0x251   :  { %v2484_v54 = vpop.f32.mrf.mxu1 }
 0x253   :  { %v2488_v55 = vpop.f32.mrf.mxu1 }
 0x255   :  { %v2490_v39 = vpop.f32.mrf.mxu1 }
 0x257   :  { %v2492_v60 = vpop.f32.mrf.mxu1 }
 0x258   :  { %v2493_v6 = vadd.f32 %v2492_v60, %v2380_v61  ;;  %v2529_v60 = vmax.f32 %v2483_v51, 0.0 }
 0x259   :  { %v2494_v1 = vpop.f32.mrf.mxu1 }
 0x25a   :  { %v2495_v35 = vadd.f32 %v2494_v1, %v2382_v50  ;;  %v2533_v1 = vmax.f32 %v2493_v6, 0.0  ;;  %v4204_v50 = vld [vmem:[#allocation10_spill] sm:$0xff] }
 0x25b   :  { %v2498_v4 = vpop.f32.mrf.mxu1 }
 0x25c   :  { %v2499_v37 = vadd.f32 %v2498_v4, %v2386_v58  ;;  %v2489_v4 = vadd.f32 %v2488_v55, %v2376_v52  ;;  %v2479_v55 = vadd.f32 %v2478_v63, %v2366_v22 }
 0x25d   :  { %v2500_v10 = vpop.f32.mrf.mxu1 }
 0x25e   :  { %v2501_v24 = vadd.f32 %v2500_v10, %v2388_v17  ;;  %v2491_v10 = vadd.f32 %v2490_v39, %v2378_v28  ;;  %v2485_v17 = vadd.f32 %v2484_v54, %v2372_v11  ;;  %v2362_v54 = vadd.f32 %v4094_v59, %v4063_v41 }
 0x25f   :  { %v2502_v14 = vpop.f32.mrf.mxu1  ;;  %v2527_v8 = vmax.f32 %v2479_v55, 0.0  ;;  %v2356_v59 = vadd.f32 %v4065_v42, %v4060_v40  ;;  %v2517_v42 = vmax.f32 %v4116_v30, 0.0  ;;  %v2510_v30 = vmax.f32 %v4089_v27, 0.0 }
 0x260   :  { %v2503_v23 = vadd.f32 %v2502_v14, %v2390_v46  ;;  %v2536_v62 = vmax.f32 %v2501_v24, 0.0  ;;  %v2535_v46 = vmax.f32 %v2499_v37, 0.0  ;;  %v2534_v14 = vmax.f32 %v2495_v35, 0.0 }
 0x261   :  { %v2504_v25 = vpop.f32.mrf.mxu1  ;;  %v2531_v35 = vmax.f32 %v2489_v4, 0.0  ;;  %v2530_v29 = vmax.f32 %v2485_v17, 0.0  ;;  %v2475_v44 = vadd.f32 %v2474_v49, %v2362_v54  ;;  %v2352_v49 = vadd.f32 %v4057_v36, %v4063_v41 }
 0x262   :  { %v2505_v38 = vadd.f32 %v2504_v25, %v2392_v18  ;;  %v2537_v33 = vmax.f32 %v2503_v23, 0.0  ;;  %v2532_v18 = vmax.f32 %v2491_v10, 0.0  ;;  %v2519_v36 = vmax.f32 %v4124_v2, 0.0 }
 0x263   :  { %v2526_v24 = vmax.f32 %v2475_v44, 0.0  ;;  %v2512_v2 = vmax.f32 %v4097_v5, 0.0  ;;  %v2544_v5 = vpop.permute.xlu0 %2543 }
 0x264   :  { %v2538_v3 = vmax.f32 %v2505_v38, 0.0 }
 0x266   :  { %2561 = vmatprep.subr.mxu0 %v2538_v3 }
 0x267   :  { %2562 = vmatpush1.xpose.msra.mxu0 %v2537_v33 }
 0x268   :  { %2563 = vmatprep.subr.mxu0 %v2536_v62  ;;  %v2368_v62 = vadd.f32 %v4110_v16, %v4063_v41  ;;  %v2360_v16 = vadd.f32 %v4086_v31, %v4060_v40  ;;  %v2469_v31 = vadd.f32 %v4133_v9, %v2356_v59  ;;  %v2520_v40 = vmax.f32 %v4127_v32, 0.0 }
 0x269   :  { %v2515_v9 = vmax.f32 %v4108_v15, 0.0  ;;  %v2513_v32 = vmax.f32 %v4100_v7, 0.0  ;;  %v2508_v15 = vmax.f32 %v4081_v0, 0.0  ;;  %v4205_v7 = vld [vmem:[#allocation11_spill] sm:$0xff] }
 0x26a   :  { %v2481_v39 = vadd.f32 %v2480_v26, %v2368_v62  ;;  %v2358_v26 = vadd.f32 %v4078_v48, %v4063_v41  ;;  %v2473_v19 = vadd.f32 %v4137_v20, %v2360_v16  ;;  %v2465_v48 = vadd.f32 %v4131_v34, %v2352_v49 }
 0x26b   :  { %2564 = vmatpush1.xpose.msra.mxu0 %v2535_v46  ;;  %v2523_v20 = vmax.f32 %v2469_v31, 0.0  ;;  %v2518_v41 = vmax.f32 %v4121_v45, 0.0  ;;  %v2516_v34 = vmax.f32 %v4113_v21, 0.0  ;;  %v2511_v45 = vmax.f32 %v4092_v57, 0.0 }
 0x26c   :  { %2565 = vmatprep.subr.mxu0 %v2534_v14  ;;  %v2528_v23 = vmax.f32 %v2481_v39, 0.0  ;;  %v2471_v25 = vadd.f32 %v4135_v56, %v2358_v26  ;;  %v2525_v63 = vmax.f32 %v2473_v19, 0.0  ;;  %v2522_v58 = vmax.f32 %v2465_v48, 0.0 }
 0x26d   :  { %v2521_v56 = vmax.f32 %v4129_v13, 0.0  ;;  %v2514_v13 = vmax.f32 %v4105_v12, 0.0  ;;  %v2509_v21 = vmax.f32 %v4084_v53, 0.0  ;;  %v2507_v12 = vmax.f32 %v4076_v47, 0.0 }
 0x26e   :  { %v2524_v38 = vmax.f32 %v2471_v25, 0.0  ;;  %v2554_v3 = vrot.slane %v4205_v7, %v4204_v50  ;;  %v2549_v57 = vrot.slane %v2544_v5, %v4204_v50 }
 0x26f   :  { %2566 = vmatpush1.xpose.msra.mxu0 %v2533_v1 }
 0x270   :  { %2567 = vmatprep.subr.mxu0 %v2532_v18 }
 0x273   :  { %2568 = vmatpush1.xpose.msra.mxu0 %v2531_v35 }
 0x274   :  { %2569 = vmatprep.subr.mxu0 %v2530_v29 }
 0x277   :  { %2570 = vmatpush1.xpose.msra.mxu0 %v2529_v60 }
 0x278   :  { %2571 = vmatprep.subr.mxu0 %v2528_v23 }
 0x27b   :  { %2572 = vmatpush1.xpose.msra.mxu0 %v2527_v8 }
 0x27c   :  { %2573 = vmatprep.subr.mxu0 %v2526_v24 }
 0x27f   :  { %2574 = vmatpush1.xpose.msra.mxu0 %v2525_v63 }
 0x280   :  { %2575 = vmatprep.subr.mxu0 %v2524_v38 }
 0x283   :  { %2576 = vmatpush1.xpose.msra.mxu0 %v2523_v20 }
 0x284   :  { %2577 = vmatprep.subr.mxu0 %v2522_v58 }
 0x287   :  { %2578 = vmatpush1.xpose.msra.mxu0 %v2521_v56 }
 0x288   :  { %2579 = vmatprep.subr.mxu0 %v2520_v40 }
 0x28b   :  { %2580 = vmatpush1.xpose.msra.mxu0 %v2519_v36 }
 0x28c   :  { %2581 = vmatprep.subr.mxu0 %v2518_v41 }
 0x28f   :  { %2582 = vmatpush1.xpose.msra.mxu0 %v2517_v42 }
 0x290   :  { %2583 = vmatprep.subr.mxu0 %v2516_v34 }
 0x293   :  { %2584 = vmatpush1.xpose.msra.mxu0 %v2515_v9 }
 0x294   :  { %2585 = vmatprep.subr.mxu0 %v2514_v13 }
 0x297   :  { %2586 = vmatpush1.xpose.msra.mxu0 %v2513_v32 }
 0x298   :  { %2587 = vmatprep.subr.mxu0 %v2512_v2 }
 0x29b   :  { %2588 = vmatpush1.xpose.msra.mxu0 %v2511_v45 }
 0x29c   :  { %2589 = vmatprep.subr.mxu0 %v2510_v30 }
 0x29f   :  { %2590 = vmatpush1.xpose.msra.mxu0 %v2509_v21 }
 0x2a0   :  { %2591 = vmatprep.subr.mxu0 %v2508_v15 }
 0x2a3   :  { %2592 = vmatpush1.xpose.msra.mxu0 %v2507_v12 }
 0x2a6   :  { %2626 = vmatmul.mubr.f32.vlgmr.msra.gmra.mxu0 %v2554_v3 }
 0x366   :  { %v2627_v27 = vpop.f32.mrf.mxu0 }
 0x367   :  { %v2628_v37 = vadd.f32 %v2627_v27, %v2549_v57 }
 0x368   :  { %v2629_v53 = vpop.f32.mrf.mxu0 }
 0x369   :  { %2631 = vst [vmem:[#allocation7] sm:$0x1] %v2628_v37 }
 0x36a   :  { %3300 = shalt.err (!%p3297_p9)
}
 0x36b   :  { %2641 = dma.vmem_to_hbm [thread:$0]  %s2639_s5, 16, %s4196_s7, [#allocation6]  }
 0x36c   :  { %3311 = dma.done.wait [#allocation6], 16  }
 0x36d   :  { %3312 = vsyncadd [#allocation6], 4294967280 }
 0x36e   :  { %2645 = vsyncpa [#allocation5], 1 }
 0x36f   :  { %2646 = vsyncpa [#allocation6], 1 }

</bundles_post_ra>
